<compile_context>
chip_gen: v5e
topology: v5e:2x2
jax: 0.10.0
libtpu: 0.0.40
codegen_flags: <defaults>
</compile_context>

<pallas_src>
import functools

import jax
import jax.numpy as jnp
import numpy as np
from jax.experimental import pallas as pl
from jax.experimental.pallas import tpu as pltpu

LATENT_DIM = 64
HIDDEN = 512
OUT = 28 * 28          # 784


def _cdiv(a, b):
    return -(-a // b)


def _round_up(x, m):
    return ((x + m - 1) // m) * m


def _choose_tiling(B, max_tile_b=1024):
    """Pick (tile_b, Bp, grid_n): tiles are multiples of 8 rows, at most
    `max_tile_b`, with >=2 tiles whenever B >= 16 (feeds both v7x TCs), and the
    batch is padded by at most 7 rows per tile (never a full extra tile)."""
    B8 = _round_up(max(B, 8), 8)
    grid_n = max(_cdiv(B8, max_tile_b), 2 if B8 >= 16 else 1)
    tile_b = _round_up(_cdiv(B8, grid_n), 8)
    Bp = grid_n * tile_b
    return tile_b, Bp, grid_n


def decoder_kernel(z_ref, w1_ref, b1_ref, w2_ref, b2_ref, o_ref):
    # z tile: (TILE_B, LATENT_DIM) f32; weights resident in VMEM as bf16.
    # Matmul inputs bf16, accumulation f32 on the MXU, bias/ReLU epilogue f32.
    z = z_ref[...].astype(w1_ref.dtype)
    h = jnp.dot(z, w1_ref[...], preferred_element_type=jnp.float32)
    h = jnp.maximum(h + b1_ref[...], 0.0)                       # bias + ReLU (f32)
    y = jnp.dot(h.astype(w2_ref.dtype), w2_ref[...],
                preferred_element_type=jnp.float32)
    y = y + b2_ref[...]
    if o_ref.dtype == jnp.bfloat16:
        # bf16 tanh on the EUP (v6e/v7x) + bf16 store: halves HBM writeback.
        o_ref[...] = jnp.tanh(y.astype(jnp.bfloat16))
    else:
        o_ref[...] = jnp.tanh(y).astype(o_ref.dtype)


def prepare_params(w1, b1, w2, b2):
    """One-time weight preparation (hoisted out of the forward pass):
    bf16 matmul weights, f32 biases shaped (1, N) for broadcasting."""
    return (w1.astype(jnp.bfloat16),
            b1.astype(jnp.float32).reshape(1, HIDDEN),
            w2.astype(jnp.bfloat16),
            b2.astype(jnp.float32).reshape(1, OUT))


def decoder_forward(z, params, *, max_tile_b=1024, out_dtype=jnp.float32):
    """z: (B, LATENT_DIM) f32; params = prepare_params(...).
    Returns (B, 1, 28, 28) NCHW, matching torch's x_recon.view(-1, 1, 28, 28)."""
    w1, b1, w2, b2 = params
    B = z.shape[0]

    tile_b, Bp, grid_n = _choose_tiling(B, max_tile_b)
    if Bp != B:
        z = jnp.pad(z, ((0, Bp - B), (0, 0)))

    out2d = pl.pallas_call(
        decoder_kernel,
        out_shape=jax.ShapeDtypeStruct((Bp, OUT), out_dtype),
        grid=(grid_n,),
        in_specs=[
            pl.BlockSpec((tile_b, LATENT_DIM), lambda i: (i, 0)),   # z: batch-tiled
            pl.BlockSpec((LATENT_DIM, HIDDEN), lambda i: (0, 0)),   # W1: resident
            pl.BlockSpec((1, HIDDEN), lambda i: (0, 0)),            # b1: resident
            pl.BlockSpec((HIDDEN, OUT), lambda i: (0, 0)),          # W2: resident
            pl.BlockSpec((1, OUT), lambda i: (0, 0)),               # b2: resident
        ],
        out_specs=pl.BlockSpec((tile_b, OUT), lambda i: (i, 0)),
        compiler_params=pltpu.CompilerParams(
            dimension_semantics=("parallel",),   # shard batch tiles over v7x's 2 TCs
            vmem_limit_bytes=32 << 20,
        ),
    )(z, w1, b1, w2, b2)

    if Bp != B:
        out2d = out2d[:B]        # contiguous leading-axis trim only (<= 7 rows/tile)
    return out2d.reshape(-1, 1, 28, 28)


def init_params(key):
    """Deterministic init matching nn.Linear default: U(-1/sqrt(fan_in), 1/sqrt(fan_in)).
    Weights stored as (in, out) so the kernel computes z @ W (== torch z @ W.T)."""
    k1, k2, k3, k4 = jax.random.split(key, 4)
    bound1 = 1.0 / np.sqrt(LATENT_DIM)
    bound2 = 1.0 / np.sqrt(HIDDEN)
    w1 = jax.random.uniform(k1, (LATENT_DIM, HIDDEN), jnp.float32, -bound1, bound1)
    b1 = jax.random.uniform(k2, (1, HIDDEN), jnp.float32, -bound1, bound1)
    w2 = jax.random.uniform(k3, (HIDDEN, OUT), jnp.float32, -bound2, bound2)
    b2 = jax.random.uniform(k4, (1, OUT), jnp.float32, -bound2, bound2)
    return w1, b1, w2, b2


def _reference(z, w1, b1, w2, b2):
    return jnp.tanh(jnp.maximum(z @ w1 + b1, 0.0) @ w2 + b2).reshape(-1, 1, 28, 28)


if __name__ == "__main__":
    key = jax.random.PRNGKey(0)
    kz1, kz2, kp = jax.random.split(key, 3)

    w1, b1, w2, b2 = init_params(kp)
    params = prepare_params(w1, b1, w2, b2)          # hoisted: once, not per call
    fwd = jax.jit(functools.partial(decoder_forward, params=params))

    # Case 1: tiny batch (single tile, grid=(1,)).
    B1 = 8
    z1 = jax.random.normal(kz1, (B1, LATENT_DIM), jnp.float32)
    out1 = jax.block_until_ready(fwd(z1))
    ref1 = _reference(z1, w1, b1, w2, b2)
    assert out1.shape == (B1, 1, 28, 28), out1.shape
    np.testing.assert_allclose(np.asarray(out1), np.asarray(ref1), rtol=0.0, atol=3e-2)

    # Case 2: awkward batch (grid=(2,), padded by <8 rows per tile, both TCs on v7x).
    B2 = 100
    z2 = jax.random.normal(kz2, (B2, LATENT_DIM), jnp.float32)
    out2 = jax.block_until_ready(fwd(z2))
    ref2 = _reference(z2, w1, b1, w2, b2)
    assert out2.shape == (B2, 1, 28, 28), out2.shape
    np.testing.assert_allclose(np.asarray(out2), np.asarray(ref2), rtol=0.0, atol=3e-2)

    print("KERNEL_OK")
</pallas_src>

<mosaic_0001>
module attributes {stable_mosaic.version = 11 : i64} {
  func.func @decoder_kernel(%arg0: i32, %arg1: memref<8x64xf32, #tpu.memory_space<vmem>>, %arg2: memref<64x512xbf16, #tpu.memory_space<vmem>>, %arg3: memref<1x512xf32, #tpu.memory_space<vmem>>, %arg4: memref<512x784xbf16, #tpu.memory_space<vmem>>, %arg5: memref<1x784xf32, #tpu.memory_space<vmem>>, %arg6: memref<8x784xf32, #tpu.memory_space<vmem>>) attributes {dimension_semantics = [#tpu.dimension_semantics<parallel>], iteration_bounds = array<i64: 1>, scalar_prefetch = 0 : i64, scratch_operands = 0 : i64, tpu.core_type = #tpu.core_type<tc>, window_params = [{transform_indices = @transform_0, window_bounds = array<i64: 8, 64>}, {pipeline_mode = #tpu.pipeline_mode<synchronous>, transform_indices = @transform_1, window_bounds = array<i64: 64, 512>}, {pipeline_mode = #tpu.pipeline_mode<synchronous>, transform_indices = @transform_2, window_bounds = array<i64: 1, 512>}, {pipeline_mode = #tpu.pipeline_mode<synchronous>, transform_indices = @transform_3, window_bounds = array<i64: 512, 784>}, {pipeline_mode = #tpu.pipeline_mode<synchronous>, transform_indices = @transform_4, window_bounds = array<i64: 1, 784>}, {transform_indices = @transform_5, window_bounds = array<i64: 8, 784>}]} {
    %c0 = arith.constant 0 : index
    %c0_0 = arith.constant 0 : index
    %0 = vector.load %arg1[%c0, %c0_0] : memref<8x64xf32, #tpu.memory_space<vmem>>, vector<8x64xf32>
    %1 = arith.truncf %0 : vector<8x64xf32> to vector<8x64xbf16>
    %c0_1 = arith.constant 0 : index
    %c0_2 = arith.constant 0 : index
    %2 = vector.load %arg2[%c0_1, %c0_2] : memref<64x512xbf16, #tpu.memory_space<vmem>>, vector<64x512xbf16>
    %cst = arith.constant dense<0.000000e+00> : vector<8x512xf32>
    %3 = tpu.matmul %1, %2, %cst {dimension_numbers = #tpu.dot_dimension_numbers<[1], [0], [0], [1], [0, 0, 1, 1], [], []>} : vector<8x64xbf16>, vector<64x512xbf16>, vector<8x512xf32> -> vector<8x512xf32>
    %c0_3 = arith.constant 0 : index
    %c0_4 = arith.constant 0 : index
    %4 = vector.load %arg3[%c0_3, %c0_4] : memref<1x512xf32, #tpu.memory_space<vmem>>, vector<1x512xf32>
    %5 = vector.broadcast %4 : vector<1x512xf32> to vector<8x512xf32>
    %6 = arith.addf %3, %5 : vector<8x512xf32>
    %cst_5 = arith.constant 0.000000e+00 : f32
    %7 = vector.broadcast %cst_5 : f32 to vector<8x512xf32>
    %8 = arith.maximumf %6, %7 : vector<8x512xf32>
    %9 = arith.truncf %8 : vector<8x512xf32> to vector<8x512xbf16>
    %c0_6 = arith.constant 0 : index
    %c0_7 = arith.constant 0 : index
    %10 = vector.load %arg4[%c0_6, %c0_7] : memref<512x784xbf16, #tpu.memory_space<vmem>>, vector<512x784xbf16>
    %cst_8 = arith.constant dense<0.000000e+00> : vector<8x784xf32>
    %11 = tpu.matmul %9, %10, %cst_8 {dimension_numbers = #tpu.dot_dimension_numbers<[1], [0], [0], [1], [0, 0, 1, 1], [], []>} : vector<8x512xbf16>, vector<512x784xbf16>, vector<8x784xf32> -> vector<8x784xf32>
    %c0_9 = arith.constant 0 : index
    %c0_10 = arith.constant 0 : index
    %12 = vector.load %arg5[%c0_9, %c0_10] : memref<1x784xf32, #tpu.memory_space<vmem>>, vector<1x784xf32>
    %13 = vector.broadcast %12 : vector<1x784xf32> to vector<8x784xf32>
    %14 = arith.addf %11, %13 : vector<8x784xf32>
    %15 = math.tanh %14 : vector<8x784xf32>
    %c0_11 = arith.constant 0 : index
    %c0_12 = arith.constant 0 : index
    %16 = vector.load %arg6[%c0_11, %c0_12] : memref<8x784xf32, #tpu.memory_space<vmem>>, vector<8x784xf32>
    tpu.vector_store %arg6[%c0_11, %c0_12], %15 {strides = array<i32>} : memref<8x784xf32, #tpu.memory_space<vmem>>, vector<8x784xf32>,
    return
  }
  func.func @transform_0(%arg0: i32) -> (i32, i32) {
    %c0_i32 = arith.constant 0 : i32
    %c0_i32_0 = arith.constant 0 : i32
    return %arg0, %c0_i32 : i32, i32
  }
  func.func @transform_1(%arg0: i32) -> (i32, i32) {
    %c0_i32 = arith.constant 0 : i32
    %c0_i32_0 = arith.constant 0 : i32
    %c0_i32_1 = arith.constant 0 : i32
    return %c0_i32, %c0_i32_0 : i32, i32
  }
  func.func @transform_2(%arg0: i32) -> (i32, i32) {
    %c0_i32 = arith.constant 0 : i32
    %c0_i32_0 = arith.constant 0 : i32
    %c0_i32_1 = arith.constant 0 : i32
    return %c0_i32, %c0_i32_0 : i32, i32
  }
  func.func @transform_3(%arg0: i32) -> (i32, i32) {
    %c0_i32 = arith.constant 0 : i32
    %c0_i32_0 = arith.constant 0 : i32
    %c0_i32_1 = arith.constant 0 : i32
    return %c0_i32, %c0_i32_0 : i32, i32
  }
  func.func @transform_4(%arg0: i32) -> (i32, i32) {
    %c0_i32 = arith.constant 0 : i32
    %c0_i32_0 = arith.constant 0 : i32
    %c0_i32_1 = arith.constant 0 : i32
    return %c0_i32, %c0_i32_0 : i32, i32
  }
  func.func @transform_5(%arg0: i32) -> (i32, i32) {
    %c0_i32 = arith.constant 0 : i32
    %c0_i32_0 = arith.constant 0 : i32
    return %arg0, %c0_i32 : i32, i32
  }
}

</mosaic_0001>

<bundles_post_ra>
// kernel: decoder_forward.1
= control target key start
LH: loop header
LB: loop body
LE: loop exit
PB: predicated region body
PF: predicated region fallthrough
CT: control target
= control target key end

     0   :  { %10 = vsyncpa [#allocation3], 0  ;;  %s3552_s0 = inlined_call_operand.hbm [shape: f32[8,64], index: 0, kind: input, shape index: {}]   ;;  %s3553_s1 = inlined_call_operand.hbm [shape: bf16[64,512], index: 1, kind: input, shape index: {}]   ;;  %s3554_s2 = inlined_call_operand.hbm [shape: f32[1,512], index: 2, kind: input, shape index: {}]   ;;  %s3555_s3 = inlined_call_operand.hbm [shape: bf16[512,784], index: 3, kind: input, shape index: {}]   ;;  %s3556_s4 = inlined_call_operand.hbm [shape: f32[1,784], index: 4, kind: input, shape index: {}]   ;;  %s3557_s5 = inlined_call_operand.vmem [shape: f32[8,784], index: 5, kind: output, shape index: {}]  }
   0x1   :  { %11 = vsyncpa [#allocation5], 0  ;;  %s28_s20 = sshll.u32 %s3553_s1, 4  ;;  %s29_s20 = int_to_ptr.hbm [resolvable:$true] %s28_s20 }
   0x2   :  { %12 = vsyncpa [#allocation8], 0  ;;  %s3428_s21 = smov [#allocation4]   ;;  %s52_s25 = sshll.u32 %s3555_s3, 4  ;;  %s53_s25 = int_to_ptr.hbm [resolvable:$true] %s52_s25 }
   0x3   :  { %s30_s22 = sshll.u32 %s3428_s21, 4  ;;  %s3429_s26 = smov 256   ;;  %s31_s22 = int_to_ptr.vmem [resolvable:$true] %s30_s22 }
   0x4   :  { %s3430_s27 = smov 16   ;;  %s3431_s28 = smov [#allocation7]  }
   0x5   :  { %36 = dma.hbm_to_vmem [thread:$0]  %s29_s20, 2048, %s31_s22, [#allocation5], %s3429_s26, %s3429_s26, %s3430_s27  }
   0x6   :  { %s54_s29 = sshll.u32 %s3431_s28, 4  ;;  %s3432_s30 = smov 448   ;;  %s55_s29 = int_to_ptr.vmem [resolvable:$true] %s54_s29 }
   0x7   :  { %s3433_s6 = smov 28   ;;  %s18_s8 = sshll.u32 %s3552_s0, 4  ;;  %s19_s8 = int_to_ptr.hbm [resolvable:$true] %s18_s8 }
   0x8   :  { %60 = dma.hbm_to_vmem [thread:$0]  %s53_s25, 28672, %s55_s29, [#allocation8], %s3432_s30, %s3432_s30, %s3433_s6  }
   0x9   :  { %s3434_s9 = smov [#allocation2]   ;;  %s42_s12 = sshll.u32 %s3554_s2, 4  ;;  %s43_s12 = int_to_ptr.hbm [resolvable:$true] %s42_s12 }
   0xa   :  { %s20_s10 = sshll.u32 %s3434_s9, 4  ;;  %s3435_s13 = smov [#allocation6]   ;;  %s21_s10 = int_to_ptr.vmem [resolvable:$true] %s20_s10 }
   0xb   :  { %23 = dma.hbm_to_vmem [thread:$0]  %s19_s8, 128, %s21_s10, [#allocation3]  }
   0xc   :  { %s44_s14 = sshll.u32 %s3435_s13, 4  ;;  %s66_s17 = sshll.u32 %s3556_s4, 4  ;;  %s45_s14 = int_to_ptr.vmem [resolvable:$true] %s44_s14  ;;  %s67_s17 = int_to_ptr.hbm [resolvable:$true] %s66_s17 }
   0xd   :  { %47 = dma.hbm_to_vmem [thread:$0]  %s43_s12, 64, %s45_s14, [#allocation5]  }
   0xe   :  { %s3436_s0 = smov [#allocation9]  }
   0xf   :  { %s68_s18 = sshll.u32 %s3436_s0, 4  ;;  %s69_s18 = int_to_ptr.vmem [resolvable:$true] %s68_s18 }
  0x10   :  { %71 = dma.hbm_to_vmem [thread:$0]  %s67_s17, 112, %s69_s18, [#allocation8]  }
  0x11   :  { %3422 = dma.done.wait [#allocation3], 128  }
  0x12   :  { %3423 = vsyncadd [#allocation3], 4294967168 }
  0x13   :  { %3424 = dma.done.wait [#allocation5], 2112  }
  0x14   :  { %3425 = vsyncadd [#allocation5], 4294965184 }
  0x15   :  { %3426 = dma.done.wait [#allocation8], 28784  }
  0x16   :  { %3427 = vsyncadd [#allocation8], 4294938512  ;;  %v2125_v0 = vld [vmem:[#allocation4 + $0x60] sm:$0xf]  ;;  %v3053_v1 = vld [vmem:[#allocation4 + $0x6c] sm:$0xf0] }
  0x17   :  { %v3051_v2 = vld [vmem:[#allocation4 + $0x64] sm:$0xf]  ;;  %v2126_v3 = vor.u32 %v3053_v1, %v2125_v0  ;;  %v2127_v4 = vld [vmem:[#allocation4 + $0x70] sm:$0xf0]  ;;  %v2133_v5 = vld [vmem:[#allocation4 + $0x68] sm:$0xf] }
  0x18   :  { %v3054_v6 = vld [vmem:[#allocation4 + $0x74] sm:$0xf0]  ;;  %v2130_v7 = vor.u32 %v3051_v2, %v2127_v4  ;;  %v3052_v9 = vld [vmem:[#allocation4 + $0x6c] sm:$0xf]  ;;  %v2135_v10 = vld [vmem:[#allocation4 + $0x78] sm:$0xf0] }
  0x19   :  { %v2134_v8 = vor.u32 %v3054_v6, %v2133_v5  ;;  %v2109_v11 = vld [vmem:[#allocation4 + $0x40] sm:$0xf]  ;;  %209 = vmatpush.bf16.msra.mxu0 %v2126_v3  ;;  %v2138_v12 = vor.u32 %v3052_v9, %v2135_v10  ;;  %v3049_v13 = vld [vmem:[#allocation4 + $0x4c] sm:$0xf0]  ;;  %v3047_v14 = vld [vmem:[#allocation4 + $0x44] sm:$0xf] }
  0x1a   :  { %v2111_v15 = vld [vmem:[#allocation4 + $0x50] sm:$0xf0]  ;;  %222 = vmatpush.bf16.msra.mxu1 %v2130_v7  ;;  %v2110_v16 = vor.u32 %v3049_v13, %v2109_v11  ;;  %v2117_v18 = vld [vmem:[#allocation4 + $0x48] sm:$0xf]  ;;  %v3050_v19 = vld [vmem:[#allocation4 + $0x54] sm:$0xf0] }
  0x1b   :  { %235 = vmatpush.bf16.msra.mxu2 %v2134_v8  ;;  %v2114_v17 = vor.u32 %v3047_v14, %v2111_v15  ;;  %v3048_v20 = vld [vmem:[#allocation4 + $0x4c] sm:$0xf]  ;;  %248 = vmatpush.bf16.msra.mxu3 %v2138_v12  ;;  %v2118_v21 = vor.u32 %v3050_v19, %v2117_v18  ;;  %v2119_v22 = vld [vmem:[#allocation4 + $0x58] sm:$0xf0]  ;;  %v2093_v23 = vld [vmem:[#allocation4 + $0x20] sm:$0xf] }
  0x1c   :  { %v3045_v24 = vld [vmem:[#allocation4 + $0x2c] sm:$0xf0]  ;;  %v2122_v25 = vor.u32 %v3048_v20, %v2119_v22  ;;  %v3043_v26 = vld [vmem:[#allocation4 + $0x24] sm:$0xf]  ;;  %v2095_v27 = vld [vmem:[#allocation4 + $0x30] sm:$0xf0] }
  0x1d   :  { %v2101_v28 = vld [vmem:[#allocation4 + $0x28] sm:$0xf]  ;;  %210 = vmatpush.bf16.msra.mxu0 %v2110_v16  ;;  %v2094_v29 = vor.u32 %v3045_v24, %v2093_v23  ;;  %v3046_v30 = vld [vmem:[#allocation4 + $0x34] sm:$0xf0]  ;;  %v3044_v31 = vld [vmem:[#allocation4 + $0x2c] sm:$0xf]  ;;  %v2098_v33 = vor.u32 %v3043_v26, %v2095_v27 }
  0x1e   :  { %v2103_v32 = vld [vmem:[#allocation4 + $0x38] sm:$0xf0]  ;;  %223 = vmatpush.bf16.msra.mxu1 %v2114_v17  ;;  %v2102_v34 = vor.u32 %v3046_v30, %v2101_v28  ;;  %v2077_v35 = vld [vmem:[#allocation4] sm:$0xf]  ;;  %v3041_v36 = vld [vmem:[#allocation4 + $0xc] sm:$0xf0] }
  0x1f   :  { %236 = vmatpush.bf16.msra.mxu2 %v2118_v21  ;;  %v3039_v37 = vld [vmem:[#allocation4 + $0x4] sm:$0xf]  ;;  %249 = vmatpush.bf16.msra.mxu3 %v2122_v25  ;;  %v2106_v38 = vor.u32 %v3044_v31, %v2103_v32  ;;  %v2079_v39 = vld [vmem:[#allocation4 + $0x10] sm:$0xf0]  ;;  %v2085_v40 = vld [vmem:[#allocation4 + $0x8] sm:$0xf]  ;;  %v2078_v45 = vor.u32 %v3041_v36, %v2077_v35 }
  0x20   :  { %v3042_v41 = vld [vmem:[#allocation4 + $0x14] sm:$0xf0]  ;;  %v3040_v42 = vld [vmem:[#allocation4 + $0xc] sm:$0xf]  ;;  %v2087_v43 = vld [vmem:[#allocation4 + $0x18] sm:$0xf0]  ;;  %v2082_v49 = vor.u32 %v3039_v37, %v2079_v39 }
  0x21   :  { %v93_v44 = vld [vmem:[#allocation2] sm:$0xff]  ;;  %211 = vmatpush.bf16.msra.mxu0 %v2094_v29  ;;  %v2341_v46 = vld [vmem:[#allocation7 + $0x188] sm:$0xf]  ;;  %v3107_v47 = vld [vmem:[#allocation7 + $0x1a0] sm:$0xf0]  ;;  %v2086_v50 = vor.u32 %v3042_v41, %v2085_v40  ;;  %v2090_v52 = vor.u32 %v3040_v42, %v2087_v43  ;;  %vm201_vm0 = vcmask 523264  }
  0x22   :  { %v2565_v48 = vld [vmem:[#allocation7 + $0x348] sm:$0xf]  ;;  %224 = vmatpush.bf16.msra.mxu1 %v2098_v33  ;;  %v3163_v51 = vld [vmem:[#allocation7 + $0x360] sm:$0xf0]  ;;  %v2342_v53 = vor.u32 %v3107_v47, %v2341_v46  ;;  %v2313_v54 = vld [vmem:[#allocation7 + $0x150] sm:$0xf]  ;;  %v94_v57 = vpack.c.bf16 %v93_v44, %v93_v44 }
  0x23   :  { %237 = vmatpush.bf16.msra.mxu2 %v2102_v34  ;;  %250 = vmatpush.bf16.msra.mxu3 %v2106_v38  ;;  %v3100_v55 = vld [vmem:[#allocation7 + $0x168] sm:$0xf0]  ;;  %v2789_v56 = vld [vmem:[#allocation7 + $0x508] sm:$0xf]  ;;  %v2566_v58 = vor.u32 %v3163_v51, %v2565_v48  ;;  %v3219_v59 = vld [vmem:[#allocation7 + $0x520] sm:$0xf0] }
  0x24   :  { %v3013_v60 = vld [vmem:[#allocation7 + $0x6c8] sm:$0xf]  ;;  %v3275_v61 = vld [vmem:[#allocation7 + $0x6e0] sm:$0xf0]  ;;  %v2537_v62 = vld [vmem:[#allocation7 + $0x310] sm:$0xf]  ;;  %v2790_v0 = vor.u32 %v3219_v59, %v2789_v56  ;;  %v2314_v1 = vor.u32 %v3100_v55, %v2313_v54 }
  0x25   :  { %212 = vmatpush.bf16.msra.mxu0 %v2078_v45  ;;  %v3156_v63 = vld [vmem:[#allocation7 + $0x328] sm:$0xf0]  ;;  %v3014_v2 = vor.u32 %v3275_v61, %v3013_v60  ;;  %v2285_v3 = vld [vmem:[#allocation7 + $0x118] sm:$0xf]  ;;  %v2761_v4 = vld [vmem:[#allocation7 + $0x4d0] sm:$0xf] }
  0x26   :  { %225 = vmatpush.bf16.msra.mxu1 %v2082_v49  ;;  %v3212_v5 = vld [vmem:[#allocation7 + $0x4e8] sm:$0xf0]  ;;  %v2538_v6 = vor.u32 %v3156_v63, %v2537_v62  ;;  %v3093_v7 = vld [vmem:[#allocation7 + $0x130] sm:$0xf0]  ;;  %v2985_v8 = vld [vmem:[#allocation7 + $0x690] sm:$0xf] }
  0x27   :  { %238 = vmatpush.bf16.msra.mxu2 %v2086_v50  ;;  %251 = vmatpush.bf16.msra.mxu3 %v2090_v52  ;;  %v3268_v9 = vld [vmem:[#allocation7 + $0x6a8] sm:$0xf0]  ;;  %v2509_v10 = vld [vmem:[#allocation7 + $0x2d8] sm:$0xf]  ;;  %v3149_v11 = vld [vmem:[#allocation7 + $0x2f0] sm:$0xf0]  ;;  %v2762_v12 = vor.u32 %v3212_v5, %v2761_v4  ;;  %v2286_v13 = vor.u32 %v3093_v7, %v2285_v3 }
  0x28   :  { %2139 = vmatmul.msk.bf16.vlgmr.msra.gmra.mxu0 %vm201_vm0, %v94_v57  ;;  %v2986_v14 = vor.u32 %v3268_v9, %v2985_v8  ;;  %v2257_v15 = vld [vmem:[#allocation7 + $0xe0] sm:$0xf]  ;;  %v2733_v16 = vld [vmem:[#allocation7 + $0x498] sm:$0xf]  ;;  %v3205_v17 = vld [vmem:[#allocation7 + $0x4b0] sm:$0xf0]  ;;  %v2510_v18 = vor.u32 %v3149_v11, %v2509_v10 }
  0x29   :  { %1689 = vmatpush.bf16.msrb.mxu0 %v2342_v53  ;;  %2140 = vmatmul.msk.bf16.vlgmr.msra.gmra.mxu1 %vm201_vm0, %v94_v57  ;;  %v3086_v19 = vld [vmem:[#allocation7 + $0xf8] sm:$0xf0]  ;;  %v2957_v20 = vld [vmem:[#allocation7 + $0x658] sm:$0xf]  ;;  %v3261_v21 = vld [vmem:[#allocation7 + $0x670] sm:$0xf0]  ;;  %v2734_v24 = vor.u32 %v3205_v17, %v2733_v16 }
  0x2a   :  { %1702 = vmatpush.bf16.msrb.mxu1 %v2566_v58  ;;  %2141 = vmatmul.msk.bf16.vlgmr.msra.gmra.mxu2 %vm201_vm0, %v94_v57  ;;  %v2481_v22 = vld [vmem:[#allocation7 + $0x2a0] sm:$0xf]  ;;  %v3142_v23 = vld [vmem:[#allocation7 + $0x2b8] sm:$0xf0]  ;;  %v2258_v25 = vor.u32 %v3086_v19, %v2257_v15  ;;  %v2958_v26 = vor.u32 %v3261_v21, %v2957_v20  ;;  %v2229_v27 = vld [vmem:[#allocation7 + $0xa8] sm:$0xf] }
  0x2b   :  { %2142 = vmatmul.msk.bf16.vlgmr.msra.gmra.mxu3 %vm201_vm0, %v94_v57  ;;  %1715 = vmatpush.bf16.msrb.mxu2 %v2790_v0  ;;  %v2705_v28 = vld [vmem:[#allocation7 + $0x460] sm:$0xf]  ;;  %v3198_v29 = vld [vmem:[#allocation7 + $0x478] sm:$0xf0]  ;;  %v2482_v30 = vor.u32 %v3142_v23, %v2481_v22  ;;  %v3079_v31 = vld [vmem:[#allocation7 + $0xc0] sm:$0xf0] }
  0x2c   :  { %1728 = vmatpush.bf16.msrb.mxu3 %v3014_v2  ;;  %v2929_v32 = vld [vmem:[#allocation7 + $0x620] sm:$0xf]  ;;  %v3254_v33 = vld [vmem:[#allocation7 + $0x638] sm:$0xf0]  ;;  %v2453_v34 = vld [vmem:[#allocation7 + $0x268] sm:$0xf]  ;;  %v2706_v36 = vor.u32 %v3198_v29, %v2705_v28  ;;  %v2230_v37 = vor.u32 %v3079_v31, %v2229_v27 }
  0x2d   :  { %1690 = vmatpush.bf16.msrb.mxu0 %v2314_v1  ;;  %v3135_v35 = vld [vmem:[#allocation7 + $0x280] sm:$0xf0]  ;;  %v2930_v38 = vor.u32 %v3254_v33, %v2929_v32  ;;  %v2201_v39 = vld [vmem:[#allocation7 + $0x70] sm:$0xf]  ;;  %v2677_v40 = vld [vmem:[#allocation7 + $0x428] sm:$0xf] }
  0x2e   :  { %1703 = vmatpush.bf16.msrb.mxu1 %v2538_v6  ;;  %v3191_v41 = vld [vmem:[#allocation7 + $0x440] sm:$0xf0]  ;;  %v2454_v42 = vor.u32 %v3135_v35, %v2453_v34  ;;  %v3072_v43 = vld [vmem:[#allocation7 + $0x88] sm:$0xf0]  ;;  %v2901_v44 = vld [vmem:[#allocation7 + $0x5e8] sm:$0xf] }
  0x2f   :  { %1716 = vmatpush.bf16.msrb.mxu2 %v2762_v12  ;;  %v3247_v45 = vld [vmem:[#allocation7 + $0x600] sm:$0xf0]  ;;  %v2425_v46 = vld [vmem:[#allocation7 + $0x230] sm:$0xf]  ;;  %v3128_v47 = vld [vmem:[#allocation7 + $0x248] sm:$0xf0]  ;;  %v2678_v48 = vor.u32 %v3191_v41, %v2677_v40  ;;  %v2202_v49 = vor.u32 %v3072_v43, %v2201_v39 }
  0x30   :  { %1729 = vmatpush.bf16.msrb.mxu3 %v2986_v14  ;;  %v2902_v50 = vor.u32 %v3247_v45, %v2901_v44  ;;  %v2173_v51 = vld [vmem:[#allocation7 + $0x38] sm:$0xf]  ;;  %v2649_v52 = vld [vmem:[#allocation7 + $0x3f0] sm:$0xf]  ;;  %v3184_v53 = vld [vmem:[#allocation7 + $0x408] sm:$0xf0]  ;;  %v2426_v54 = vor.u32 %v3128_v47, %v2425_v46 }
  0x31   :  { %1691 = vmatpush.bf16.msrb.mxu0 %v2286_v13  ;;  %v3065_v55 = vld [vmem:[#allocation7 + $0x50] sm:$0xf0]  ;;  %v2873_v56 = vld [vmem:[#allocation7 + $0x5b0] sm:$0xf]  ;;  %v3240_v57 = vld [vmem:[#allocation7 + $0x5c8] sm:$0xf0]  ;;  %v2650_v60 = vor.u32 %v3184_v53, %v2649_v52 }
  0x32   :  { %1704 = vmatpush.bf16.msrb.mxu1 %v2510_v18  ;;  %v2397_v58 = vld [vmem:[#allocation7 + $0x1f8] sm:$0xf]  ;;  %v3121_v59 = vld [vmem:[#allocation7 + $0x210] sm:$0xf0]  ;;  %v2145_v61 = vld [vmem:[#allocation7] sm:$0xf]  ;;  %v2174_v62 = vor.u32 %v3065_v55, %v2173_v51  ;;  %v2874_v63 = vor.u32 %v3240_v57, %v2873_v56 }
  0x33   :  { %1717 = vmatpush.bf16.msrb.mxu2 %v2734_v24  ;;  %v3058_v0 = vld [vmem:[#allocation7 + $0x18] sm:$0xf0]  ;;  %v2621_v1 = vld [vmem:[#allocation7 + $0x3b8] sm:$0xf]  ;;  %v3177_v2 = vld [vmem:[#allocation7 + $0x3d0] sm:$0xf0]  ;;  %v2398_v3 = vor.u32 %v3121_v59, %v2397_v58 }
  0x34   :  { %1730 = vmatpush.bf16.msrb.mxu3 %v2958_v26  ;;  %v2369_v4 = vld [vmem:[#allocation7 + $0x1c0] sm:$0xf]  ;;  %v2845_v5 = vld [vmem:[#allocation7 + $0x578] sm:$0xf]  ;;  %v3233_v6 = vld [vmem:[#allocation7 + $0x590] sm:$0xf0]  ;;  %v2622_v12 = vor.u32 %v3177_v2, %v2621_v1  ;;  %v2146_v13 = vor.u32 %v3058_v0, %v2145_v61 }
  0x35   :  { %1692 = vmatpush.bf16.msrb.mxu0 %v2258_v25  ;;  %v3114_v7 = vld [vmem:[#allocation7 + $0x1d8] sm:$0xf0]  ;;  %v3104_v8 = vld [vmem:[#allocation7 + $0x18c] sm:$0xf]  ;;  %v2343_v9 = vld [vmem:[#allocation7 + $0x1a4] sm:$0xf0]  ;;  %v2846_v14 = vor.u32 %v3233_v6, %v2845_v5 }
  0x36   :  { %1705 = vmatpush.bf16.msrb.mxu1 %v2482_v30  ;;  %v3160_v10 = vld [vmem:[#allocation7 + $0x34c] sm:$0xf]  ;;  %v2567_v11 = vld [vmem:[#allocation7 + $0x364] sm:$0xf0]  ;;  %v3097_v15 = vld [vmem:[#allocation7 + $0x154] sm:$0xf]  ;;  %v2370_v19 = vor.u32 %v3114_v7, %v2369_v4  ;;  %v2346_v20 = vor.u32 %v3104_v8, %v2343_v9 }
  0x37   :  { %1718 = vmatpush.bf16.msrb.mxu2 %v2706_v36  ;;  %v2593_v16 = vld [vmem:[#allocation7 + $0x380] sm:$0xf]  ;;  %v3170_v17 = vld [vmem:[#allocation7 + $0x398] sm:$0xf0]  ;;  %v3216_v22 = vld [vmem:[#allocation7 + $0x50c] sm:$0xf]  ;;  %v2570_v24 = vor.u32 %v3160_v10, %v2567_v11 }
  0x38   :  { %1731 = vmatpush.bf16.msrb.mxu3 %v2930_v38  ;;  %v2817_v18 = vld [vmem:[#allocation7 + $0x540] sm:$0xf]  ;;  %v3226_v21 = vld [vmem:[#allocation7 + $0x558] sm:$0xf0]  ;;  %v2791_v23 = vld [vmem:[#allocation7 + $0x524] sm:$0xf0]  ;;  %v2594_v30 = vor.u32 %v3170_v17, %v2593_v16 }
  0x39   :  { %1693 = vmatpush.bf16.msrb.mxu0 %v2230_v37  ;;  %v2315_v25 = vld [vmem:[#allocation7 + $0x16c] sm:$0xf0]  ;;  %v3272_v26 = vld [vmem:[#allocation7 + $0x6cc] sm:$0xf]  ;;  %v3015_v27 = vld [vmem:[#allocation7 + $0x6e4] sm:$0xf0]  ;;  %v2818_v31 = vor.u32 %v3226_v21, %v2817_v18  ;;  %v2794_v32 = vor.u32 %v3216_v22, %v2791_v23 }
  0x3a   :  { %1706 = vmatpush.bf16.msrb.mxu1 %v2454_v42  ;;  %v3153_v28 = vld [vmem:[#allocation7 + $0x314] sm:$0xf]  ;;  %v2539_v29 = vld [vmem:[#allocation7 + $0x32c] sm:$0xf0]  ;;  %v2318_v33 = vor.u32 %v3097_v15, %v2315_v25  ;;  %v3018_v34 = vor.u32 %v3272_v26, %v3015_v27  ;;  %v3090_v35 = vld [vmem:[#allocation7 + $0x11c] sm:$0xf] }
  0x3b   :  { %1719 = vmatpush.bf16.msrb.mxu2 %v2678_v48  ;;  %v3209_v36 = vld [vmem:[#allocation7 + $0x4d4] sm:$0xf]  ;;  %v2763_v37 = vld [vmem:[#allocation7 + $0x4ec] sm:$0xf0]  ;;  %v2542_v38 = vor.u32 %v3153_v28, %v2539_v29  ;;  %v2287_v39 = vld [vmem:[#allocation7 + $0x134] sm:$0xf0] }
  0x3c   :  { %1732 = vmatpush.bf16.msrb.mxu3 %v2902_v50  ;;  %v3265_v40 = vld [vmem:[#allocation7 + $0x694] sm:$0xf]  ;;  %v2987_v41 = vld [vmem:[#allocation7 + $0x6ac] sm:$0xf0]  ;;  %v3146_v42 = vld [vmem:[#allocation7 + $0x2dc] sm:$0xf]  ;;  %v2766_v44 = vor.u32 %v3209_v36, %v2763_v37  ;;  %v2290_v45 = vor.u32 %v3090_v35, %v2287_v39 }
  0x3d   :  { %1694 = vmatpush.bf16.msrb.mxu0 %v2202_v49  ;;  %v2511_v43 = vld [vmem:[#allocation7 + $0x2f4] sm:$0xf0]  ;;  %v2990_v46 = vor.u32 %v3265_v40, %v2987_v41  ;;  %v3083_v47 = vld [vmem:[#allocation7 + $0xe4] sm:$0xf]  ;;  %v3202_v48 = vld [vmem:[#allocation7 + $0x49c] sm:$0xf] }
  0x3e   :  { %1707 = vmatpush.bf16.msrb.mxu1 %v2426_v54  ;;  %v2735_v49 = vld [vmem:[#allocation7 + $0x4b4] sm:$0xf0]  ;;  %v2514_v50 = vor.u32 %v3146_v42, %v2511_v43  ;;  %v2259_v51 = vld [vmem:[#allocation7 + $0xfc] sm:$0xf0]  ;;  %v3258_v52 = vld [vmem:[#allocation7 + $0x65c] sm:$0xf] }
  0x3f   :  { %1720 = vmatpush.bf16.msrb.mxu2 %v2650_v60  ;;  %v2959_v53 = vld [vmem:[#allocation7 + $0x674] sm:$0xf0]  ;;  %v3139_v54 = vld [vmem:[#allocation7 + $0x2a4] sm:$0xf]  ;;  %v2483_v55 = vld [vmem:[#allocation7 + $0x2bc] sm:$0xf0]  ;;  %v2738_v56 = vor.u32 %v3202_v48, %v2735_v49  ;;  %v2262_v57 = vor.u32 %v3083_v47, %v2259_v51 }
  0x40   :  { %1733 = vmatpush.bf16.msrb.mxu3 %v2874_v63  ;;  %v2962_v58 = vor.u32 %v3258_v52, %v2959_v53  ;;  %v3076_v59 = vld [vmem:[#allocation7 + $0xac] sm:$0xf]  ;;  %v3195_v60 = vld [vmem:[#allocation7 + $0x464] sm:$0xf]  ;;  %v2707_v61 = vld [vmem:[#allocation7 + $0x47c] sm:$0xf0] }
  0x41   :  { %1695 = vmatpush.bf16.msrb.mxu0 %v2174_v62  ;;  %v2486_v62 = vor.u32 %v3139_v54, %v2483_v55  ;;  %v2231_v63 = vld [vmem:[#allocation7 + $0xc4] sm:$0xf0]  ;;  %v3251_v0 = vld [vmem:[#allocation7 + $0x624] sm:$0xf]  ;;  %v2931_v1 = vld [vmem:[#allocation7 + $0x63c] sm:$0xf0]  ;;  %v2710_v4 = vor.u32 %v3195_v60, %v2707_v61 }
  0x42   :  { %1708 = vmatpush.bf16.msrb.mxu1 %v2398_v3  ;;  %v3132_v2 = vld [vmem:[#allocation7 + $0x26c] sm:$0xf]  ;;  %v2455_v3 = vld [vmem:[#allocation7 + $0x284] sm:$0xf0]  ;;  %v2234_v5 = vor.u32 %v3076_v59, %v2231_v63  ;;  %v2934_v6 = vor.u32 %v3251_v0, %v2931_v1  ;;  %v3069_v8 = vld [vmem:[#allocation7 + $0x74] sm:$0xf] }
  0x43   :  { %1721 = vmatpush.bf16.msrb.mxu2 %v2622_v12  ;;  %v2458_v7 = vor.u32 %v3132_v2, %v2455_v3  ;;  %v2203_v9 = vld [vmem:[#allocation7 + $0x8c] sm:$0xf0]  ;;  %v3125_v10 = vld [vmem:[#allocation7 + $0x234] sm:$0xf]  ;;  %v2679_v15 = vld [vmem:[#allocation7 + $0x444] sm:$0xf0] }
  0x44   :  { %1734 = vmatpush.bf16.msrb.mxu3 %v2846_v14  ;;  %v2427_v11 = vld [vmem:[#allocation7 + $0x24c] sm:$0xf0]  ;;  %v2206_v12 = vor.u32 %v3069_v8, %v2203_v9  ;;  %v3188_v14 = vld [vmem:[#allocation7 + $0x42c] sm:$0xf]  ;;  %v2903_v18 = vld [vmem:[#allocation7 + $0x604] sm:$0xf0] }
  0x45   :  { %1696 = vmatpush.bf16.msrb.mxu0 %v2146_v13  ;;  %v2430_v13 = vor.u32 %v3125_v10, %v2427_v11  ;;  %v3244_v16 = vld [vmem:[#allocation7 + $0x5ec] sm:$0xf]  ;;  %v2682_v17 = vor.u32 %v3188_v14, %v2679_v15  ;;  %v2175_v21 = vld [vmem:[#allocation7 + $0x54] sm:$0xf0]  ;;  %v3118_v23 = vld [vmem:[#allocation7 + $0x1fc] sm:$0xf] }
  0x46   :  { %1709 = vmatpush.bf16.msrb.mxu1 %v2370_v19  ;;  %v2906_v19 = vor.u32 %v3244_v16, %v2903_v18  ;;  %v3181_v26 = vld [vmem:[#allocation7 + $0x3f4] sm:$0xf]  ;;  %v2651_v27 = vld [vmem:[#allocation7 + $0x40c] sm:$0xf0]  ;;  %v2371_v36 = vld [vmem:[#allocation7 + $0x1dc] sm:$0xf0] }
  0x47   :  { %1722 = vmatpush.bf16.msrb.mxu2 %v2594_v30  ;;  %v3237_v28 = vld [vmem:[#allocation7 + $0x5b4] sm:$0xf]  ;;  %v2654_v29 = vor.u32 %v3181_v26, %v2651_v27  ;;  %v2875_v30 = vld [vmem:[#allocation7 + $0x5cc] sm:$0xf0]  ;;  %v2623_v39 = vld [vmem:[#allocation7 + $0x3d4] sm:$0xf0] }
  0x48   :  { %1735 = vmatpush.bf16.msrb.mxu3 %v2818_v31  ;;  %v2878_v31 = vor.u32 %v3237_v28, %v2875_v30  ;;  %v3230_v41 = vld [vmem:[#allocation7 + $0x57c] sm:$0xf]  ;;  %v2847_v42 = vld [vmem:[#allocation7 + $0x594] sm:$0xf0]  ;;  %v3223_v47 = vld [vmem:[#allocation7 + $0x544] sm:$0xf] }
  0x49   :  { %1741 = vmatpush.bf16.msra.mxu0 %v2346_v20  ;;  %v3062_v20 = vld [vmem:[#allocation7 + $0x3c] sm:$0xf]  ;;  %v2850_v43 = vor.u32 %v3230_v41, %v2847_v42  ;;  %v2819_v48 = vld [vmem:[#allocation7 + $0x55c] sm:$0xf0]  ;;  %v2573_v59 = vld [vmem:[#allocation7 + $0x350] sm:$0xf] }
  0x4a   :  { %1754 = vmatpush.bf16.msra.mxu1 %v2570_v24  ;;  %v2178_v22 = vor.u32 %v3062_v20, %v2175_v21  ;;  %v2399_v24 = vld [vmem:[#allocation7 + $0x214] sm:$0xf0]  ;;  %v2822_v49 = vor.u32 %v3223_v47, %v2819_v48  ;;  %v3164_v60 = vld [vmem:[#allocation7 + $0x368] sm:$0xf0]  ;;  %v3157_v8 = vld [vmem:[#allocation7 + $0x330] sm:$0xf0] }
  0x4b   :  { %1767 = vmatpush.bf16.msra.mxu2 %v2794_v32  ;;  %v2402_v25 = vor.u32 %v3118_v23, %v2399_v24  ;;  %v3055_v32 = vld [vmem:[#allocation7 + $0x4] sm:$0xf]  ;;  %v2574_v3 = vor.u32 %v3164_v60, %v2573_v59  ;;  %v2797_v14 = vld [vmem:[#allocation7 + $0x510] sm:$0xf]  ;;  %v3220_v15 = vld [vmem:[#allocation7 + $0x528] sm:$0xf0] }
  0x4c   :  { %1780 = vmatpush.bf16.msra.mxu3 %v3018_v34  ;;  %v3111_v34 = vld [vmem:[#allocation7 + $0x1c4] sm:$0xf]  ;;  %v3021_v16 = vld [vmem:[#allocation7 + $0x6d0] sm:$0xf]  ;;  %v3276_v20 = vld [vmem:[#allocation7 + $0x6e8] sm:$0xf0]  ;;  %v2798_v27 = vor.u32 %v3220_v15, %v2797_v14 }
  0x4d   :  { %1742 = vmatpush.bf16.msra.mxu0 %v2318_v33  ;;  %v2147_v33 = vld [vmem:[#allocation7 + $0x1c] sm:$0xf0]  ;;  %v2374_v37 = vor.u32 %v3111_v34, %v2371_v36  ;;  %v3269_v36 = vld [vmem:[#allocation7 + $0x6b0] sm:$0xf0]  ;;  %v3206_v47 = vld [vmem:[#allocation7 + $0x4b8] sm:$0xf0] }
  0x4e   :  { %1755 = vmatpush.bf16.msra.mxu1 %v2542_v38  ;;  %v2150_v35 = vor.u32 %v3055_v32, %v2147_v33  ;;  %v3174_v38 = vld [vmem:[#allocation7 + $0x3bc] sm:$0xf]  ;;  %v2293_v21 = vld [vmem:[#allocation7 + $0x120] sm:$0xf]  ;;  %v3213_v32 = vld [vmem:[#allocation7 + $0x4f0] sm:$0xf0] }
  0x4f   :  { %1768 = vmatpush.bf16.msra.mxu2 %v2766_v44  ;;  %v2626_v40 = vor.u32 %v3174_v38, %v2623_v39  ;;  %v3167_v44 = vld [vmem:[#allocation7 + $0x384] sm:$0xf]  ;;  %v2517_v24 = vld [vmem:[#allocation7 + $0x2e0] sm:$0xf]  ;;  %v2993_v33 = vld [vmem:[#allocation7 + $0x698] sm:$0xf] }
  0x50   :  { %1781 = vmatpush.bf16.msra.mxu3 %v2990_v46  ;;  %v3087_v38 = vld [vmem:[#allocation7 + $0x100] sm:$0xf0]  ;;  %v2489_v39 = vld [vmem:[#allocation7 + $0x2a8] sm:$0xf]  ;;  %v3066_v14 = vld [vmem:[#allocation7 + $0x58] sm:$0xf0] }
  0x51   :  { %1743 = vmatpush.bf16.msra.mxu0 %v2290_v45  ;;  %v2595_v45 = vld [vmem:[#allocation7 + $0x39c] sm:$0xf0]  ;;  %vm2066_vm1 = vcmask 130048  }
  0x52   :  { %1756 = vmatpush.bf16.msra.mxu1 %v2514_v50  ;;  %v2598_v46 = vor.u32 %v3167_v44, %v2595_v45  ;;  %v111_v50 = vld [vmem:[#allocation6] sm:$0xf]  ;;  %v2994_v44 = vor.u32 %v3269_v36, %v2993_v33  ;;  %v2405_v15 = vld [vmem:[#allocation7 + $0x200] sm:$0xf]  ;;  %v3161_v33 = vld [vmem:[#allocation7 + $0x354] sm:$0xf] }
  0x53   :  { %1769 = vmatpush.bf16.msra.mxu2 %v2738_v56  ;;  %v113_v51 = vperm.slane %v111_v50, 0  ;;  %v114_v52 = vperm.slane %v111_v50, 1  ;;  %v2349_v56 = vld [vmem:[#allocation7 + $0x190] sm:$0xf]  ;;  %v115_v63 = vperm.slane %v111_v50, 2  ;;  %v116_v2 = vperm.slane %v111_v50, 3 }
  0x54   :  { %1782 = vmatpush.bf16.msra.mxu3 %v2962_v58  ;;  %v3262_v50 = vld [vmem:[#allocation7 + $0x678] sm:$0xf0] }
  0x55   :  { %1744 = vmatpush.bf16.msra.mxu0 %v2262_v57  ;;  %v3108_v57 = vld [vmem:[#allocation7 + $0x1a8] sm:$0xf0] }
  0x56   :  { %1757 = vmatpush.bf16.msra.mxu1 %v2486_v62  ;;  %v2350_v0 = vor.u32 %v3108_v57, %v2349_v56  ;;  %v2713_v57 = vld [vmem:[#allocation7 + $0x468] sm:$0xf] }
  0x57   :  { %1770 = vmatpush.bf16.msra.mxu2 %v2710_v4  ;;  %v2321_v4 = vld [vmem:[#allocation7 + $0x158] sm:$0xf] }
  0x58   :  { %1783 = vmatpush.bf16.msra.mxu3 %v2934_v6 }
  0x59   :  { %1745 = vmatpush.bf16.msra.mxu0 %v2234_v5  ;;  %v3101_v5 = vld [vmem:[#allocation7 + $0x170] sm:$0xf0] }
  0x5a   :  { %1758 = vmatpush.bf16.msra.mxu1 %v2458_v7  ;;  %v2545_v7 = vld [vmem:[#allocation7 + $0x318] sm:$0xf] }
  0x5b   :  { %1771 = vmatpush.bf16.msra.mxu2 %v2682_v17 }
  0x5c   :  { %1784 = vmatpush.bf16.msra.mxu3 %v2906_v19  ;;  %v2546_v19 = vor.u32 %v3157_v8, %v2545_v7  ;;  %v2685_v7 = vld [vmem:[#allocation7 + $0x430] sm:$0xf]  ;;  %v3192_v8 = vld [vmem:[#allocation7 + $0x448] sm:$0xf0] }
  0x5d   :  { %1746 = vmatpush.bf16.msra.mxu0 %v2206_v12 }
  0x5e   :  { %1759 = vmatpush.bf16.msra.mxu1 %v2430_v13  ;;  %v2322_v13 = vor.u32 %v3101_v5, %v2321_v4 }
  0x5f   :  { %1772 = vmatpush.bf16.msra.mxu2 %v2654_v29  ;;  %v3022_v29 = vor.u32 %v3276_v20, %v3021_v16  ;;  %v3122_v16 = vld [vmem:[#allocation7 + $0x218] sm:$0xf0]  ;;  %v3185_v20 = vld [vmem:[#allocation7 + $0x410] sm:$0xf0] }
  0x60   :  { %1785 = vmatpush.bf16.msra.mxu3 %v2878_v31  ;;  %v2769_v31 = vld [vmem:[#allocation7 + $0x4d8] sm:$0xf] }
  0x61   :  { %1747 = vmatpush.bf16.msra.mxu0 %v2178_v22  ;;  %v3094_v22 = vld [vmem:[#allocation7 + $0x138] sm:$0xf0]  ;;  %v2770_v42 = vor.u32 %v3213_v32, %v2769_v31  ;;  %v2351_v32 = vld [vmem:[#allocation7 + $0x1ac] sm:$0xf0] }
  0x62   :  { %1760 = vmatpush.bf16.msra.mxu1 %v2402_v25  ;;  %v3150_v25 = vld [vmem:[#allocation7 + $0x2f8] sm:$0xf0]  ;;  %v2294_v30 = vor.u32 %v3094_v22, %v2293_v21  ;;  %v2881_v21 = vld [vmem:[#allocation7 + $0x5b8] sm:$0xf] }
  0x63   :  { %1773 = vmatpush.bf16.msra.mxu2 %v2626_v40  ;;  %v3143_v40 = vld [vmem:[#allocation7 + $0x2c0] sm:$0xf0] }
  0x64   :  { %1786 = vmatpush.bf16.msra.mxu3 %v2850_v43  ;;  %v2490_v48 = vor.u32 %v3143_v40, %v2489_v39 }
  0x65   :  { %1748 = vmatpush.bf16.msra.mxu0 %v2150_v35  ;;  %v2518_v35 = vor.u32 %v3150_v25, %v2517_v24  ;;  %v3241_v24 = vld [vmem:[#allocation7 + $0x5d0] sm:$0xf0]  ;;  %v2153_v25 = vld [vmem:[#allocation7 + $0x8] sm:$0xf] }
  0x66   :  { %1761 = vmatpush.bf16.msra.mxu1 %v2374_v37  ;;  %v2265_v37 = vld [vmem:[#allocation7 + $0xe8] sm:$0xf]  ;;  %v2882_v36 = vor.u32 %v3241_v24, %v2881_v21  ;;  %v2967_v24 = vld [vmem:[#allocation7 + $0x67c] sm:$0xf0] }
  0x67   :  { %1774 = vmatpush.bf16.msra.mxu2 %v2598_v46  ;;  %v2266_v45 = vor.u32 %v3087_v38, %v2265_v37  ;;  %v2741_v46 = vld [vmem:[#allocation7 + $0x4a0] sm:$0xf]  ;;  %v3178_v38 = vld [vmem:[#allocation7 + $0x3d8] sm:$0xf0] }
  0x68   :  { %1787 = vmatpush.bf16.msra.mxu3 %v2822_v49  ;;  %v2965_v49 = vld [vmem:[#allocation7 + $0x660] sm:$0xf] }
  0x69   :  { %v2966_v56 = vor.u32 %v3262_v50, %v2965_v49  ;;  %v2629_v37 = vld [vmem:[#allocation7 + $0x3c0] sm:$0xf]  ;;  %v2547_v49 = vld [vmem:[#allocation7 + $0x334] sm:$0xf0] }
  0xa5   :  { %v214_v53 = vpop.f32.mrf.mxu0 }
  0xa6   :  { %v215_v54 = vadd.f32 %v214_v53, %v113_v51  ;;  %v227_v55 = vpop.f32.mrf.mxu1  ;;  %v2237_v51 = vld [vmem:[#allocation7 + $0xb0] sm:$0xf] }
  0xa7   :  { %v228_v58 = vadd.f32 %v227_v55, %v114_v52  ;;  %v3080_v52 = vld [vmem:[#allocation7 + $0xc8] sm:$0xf0]  ;;  %v2461_v53 = vld [vmem:[#allocation7 + $0x270] sm:$0xf]  ;;  %v2742_v55 = vor.u32 %v3206_v47, %v2741_v46  ;;  %v2630_v46 = vor.u32 %v3178_v38, %v2629_v37  ;;  %v2323_v47 = vld [vmem:[#allocation7 + $0x174] sm:$0xf0] }
  0xa8   :  { %v257_v61 = vmax.f32 %v215_v54, 0.0  ;;  %v3136_v54 = vld [vmem:[#allocation7 + $0x288] sm:$0xf0]  ;;  %v2238_v59 = vor.u32 %v3080_v52, %v2237_v51  ;;  %v2601_v51 = vld [vmem:[#allocation7 + $0x388] sm:$0xf] }
  0xa9   :  { %v258_v62 = vmax.f32 %v228_v58, 0.0  ;;  %v3199_v58 = vld [vmem:[#allocation7 + $0x480] sm:$0xf0]  ;;  %v2462_v60 = vor.u32 %v3136_v54, %v2461_v53  ;;  %v2825_v53 = vld [vmem:[#allocation7 + $0x548] sm:$0xf] }
  0xaa   :  { %v3486_v1 = vpack.c.bf16 %v257_v61, %v257_v61  ;;  %v2937_v61 = vld [vmem:[#allocation7 + $0x628] sm:$0xf]  ;;  %v2714_v4 = vor.u32 %v3199_v58, %v2713_v57  ;;  %v3171_v52 = vld [vmem:[#allocation7 + $0x3a0] sm:$0xf0]  ;;  %v3252_v37 = vld [vmem:[#allocation7 + $0x62c] sm:$0xf] }
  0xab   :  { %v3488_v6 = vpack.c.bf16 %v258_v62, %v258_v62  ;;  %v3255_v62 = vld [vmem:[#allocation7 + $0x640] sm:$0xf0]  ;;  %v2939_v38 = vld [vmem:[#allocation7 + $0x644] sm:$0xf0] }
  0xac   :  { %1697 = vmatmul.bf16.vlgmr.msrb.gmra.mxu0 %v3486_v1  ;;  %v2938_v5 = vor.u32 %v3255_v62, %v2937_v61  ;;  %v3227_v54 = vld [vmem:[#allocation7 + $0x560] sm:$0xf0]  ;;  %v2602_v62 = vor.u32 %v3171_v52, %v2601_v51  ;;  %v2183_v52 = vld [vmem:[#allocation7 + $0x5c] sm:$0xf0] }
  0xad   :  { %v240_v9 = vpop.f32.mrf.mxu2  ;;  %1710 = vmatmul.bf16.vlgmr.msrb.gmra.mxu1 %v3488_v6  ;;  %1793 = vmatpush.bf16.msrb.mxu0 %v2350_v0  ;;  %v216_v12 = vpop.f32.mrf.mxu0  ;;  %v3073_v0 = vld [vmem:[#allocation7 + $0x90] sm:$0xf0]  ;;  %v3091_v61 = vld [vmem:[#allocation7 + $0x124] sm:$0xf] }
  0xae   :  { %v241_v10 = vadd.f32 %v240_v9, %v115_v63  ;;  %v253_v11 = vpop.f32.mrf.mxu3  ;;  %1806 = vmatpush.bf16.msrb.mxu1 %v2574_v3  ;;  %v229_v18 = vpop.f32.mrf.mxu1  ;;  %v2209_v63 = vld [vmem:[#allocation7 + $0x78] sm:$0xf]  ;;  %v3129_v3 = vld [vmem:[#allocation7 + $0x250] sm:$0xf0]  ;;  %v3248_v12 = vld [vmem:[#allocation7 + $0x608] sm:$0xf0] }
  0xaf   :  { %v254_v17 = vadd.f32 %v253_v11, %v116_v2  ;;  %v2433_v2 = vld [vmem:[#allocation7 + $0x238] sm:$0xf]  ;;  %v2210_v9 = vor.u32 %v3073_v0, %v2209_v63  ;;  %v2909_v11 = vld [vmem:[#allocation7 + $0x5f0] sm:$0xf]  ;;  %v2295_v63 = vld [vmem:[#allocation7 + $0x13c] sm:$0xf0] }
  0xb0   :  { %v259_v23 = vmax.f32 %v241_v10, 0.0  ;;  %v2434_v10 = vor.u32 %v3129_v3, %v2433_v2  ;;  %v2910_v18 = vor.u32 %v3248_v12, %v2909_v11  ;;  %v3147_v0 = vld [vmem:[#allocation7 + $0x2e4] sm:$0xf]  ;;  %v2519_v2 = vld [vmem:[#allocation7 + $0x2fc] sm:$0xf0]  ;;  %v2826_v3 = vor.u32 %v3227_v54, %v2825_v53 }
  0xb1   :  { %v260_v26 = vmax.f32 %v254_v17, 0.0  ;;  %1794 = vmatpush.bf16.msrb.mxu0 %v2322_v13  ;;  %v2181_v13 = vld [vmem:[#allocation7 + $0x40] sm:$0xf]  ;;  %v2686_v17 = vor.u32 %v3192_v8, %v2685_v7  ;;  %v3210_v7 = vld [vmem:[#allocation7 + $0x4dc] sm:$0xf] }
  0xb2   :  { %v3492_v28 = vpack.c.bf16 %v259_v23, %v259_v23  ;;  %1807 = vmatpush.bf16.msrb.mxu1 %v2546_v19  ;;  %v2657_v19 = vld [vmem:[#allocation7 + $0x3f8] sm:$0xf]  ;;  %v2182_v22 = vor.u32 %v3066_v14, %v2181_v13  ;;  %v2406_v23 = vor.u32 %v3122_v16, %v2405_v15  ;;  %v3266_v11 = vld [vmem:[#allocation7 + $0x69c] sm:$0xf]  ;;  %v3084_v13 = vld [vmem:[#allocation7 + $0xec] sm:$0xf] }
  0xb3   :  { %v3494_v34 = vpack.c.bf16 %v260_v26, %v260_v26  ;;  %v3059_v26 = vld [vmem:[#allocation7 + $0x20] sm:$0xf0]  ;;  %v2658_v31 = vor.u32 %v3185_v20, %v2657_v19  ;;  %v2771_v8 = vld [vmem:[#allocation7 + $0x4f4] sm:$0xf0]  ;;  %v2267_v14 = vld [vmem:[#allocation7 + $0x104] sm:$0xf0] }
  0xb4   :  { %1723 = vmatmul.bf16.vlgmr.msrb.gmra.mxu2 %v3492_v28  ;;  %v2154_v39 = vor.u32 %v3059_v26, %v2153_v25  ;;  %v2995_v12 = vld [vmem:[#allocation7 + $0x6b4] sm:$0xf0]  ;;  %v3140_v15 = vld [vmem:[#allocation7 + $0x2ac] sm:$0xf]  ;;  %v2491_v16 = vld [vmem:[#allocation7 + $0x2c4] sm:$0xf0]  ;;  %v2270_v21 = vor.u32 %v3084_v13, %v2267_v14 }
  0xb5   :  { %1736 = vmatmul.bf16.vlgmr.msrb.gmra.mxu3 %v3494_v34  ;;  %1819 = vmatpush.bf16.msrb.mxu2 %v2798_v27  ;;  %v242_v41 = vpop.f32.mrf.mxu2  ;;  %v2377_v27 = vld [vmem:[#allocation7 + $0x1c8] sm:$0xf]  ;;  %v3203_v19 = vld [vmem:[#allocation7 + $0x4a4] sm:$0xf]  ;;  %v2743_v20 = vld [vmem:[#allocation7 + $0x4bc] sm:$0xf0] }
  0xb6   :  { %1832 = vmatpush.bf16.msrb.mxu3 %v3022_v29  ;;  %v255_v43 = vpop.f32.mrf.mxu3  ;;  %1795 = vmatpush.bf16.msrb.mxu0 %v2294_v30  ;;  %v3115_v29 = vld [vmem:[#allocation7 + $0x1e0] sm:$0xf0]  ;;  %v3105_v30 = vld [vmem:[#allocation7 + $0x194] sm:$0xf]  ;;  %v2853_v41 = vld [vmem:[#allocation7 + $0x580] sm:$0xf] }
  0xb7   :  { %1808 = vmatpush.bf16.msrb.mxu1 %v2518_v35  ;;  %v2575_v35 = vld [vmem:[#allocation7 + $0x36c] sm:$0xf0]  ;;  %v2378_v40 = vor.u32 %v3115_v29, %v2377_v27  ;;  %v2354_v43 = vor.u32 %v3105_v30, %v2351_v32  ;;  %v3077_v25 = vld [vmem:[#allocation7 + $0xb4] sm:$0xf]  ;;  %v2746_v30 = vor.u32 %v3203_v19, %v2743_v20  ;;  %v3196_v32 = vld [vmem:[#allocation7 + $0x46c] sm:$0xf] }
  0xb8   :  { %v2239_v26 = vld [vmem:[#allocation7 + $0xcc] sm:$0xf0]  ;;  %v3133_v27 = vld [vmem:[#allocation7 + $0x274] sm:$0xf]  ;;  %v3063_v51 = vld [vmem:[#allocation7 + $0x44] sm:$0xf] }
  0xb9   :  { %1820 = vmatpush.bf16.msrb.mxu2 %v2770_v42  ;;  %v3234_v42 = vld [vmem:[#allocation7 + $0x598] sm:$0xf0]  ;;  %v2463_v29 = vld [vmem:[#allocation7 + $0x28c] sm:$0xf0]  ;;  %v3119_v53 = vld [vmem:[#allocation7 + $0x204] sm:$0xf] }
  0xba   :  { %1833 = vmatpush.bf16.msrb.mxu3 %v2994_v44  ;;  %1796 = vmatpush.bf16.msrb.mxu0 %v2266_v45  ;;  %v2578_v44 = vor.u32 %v3161_v33, %v2575_v35  ;;  %v3098_v45 = vld [vmem:[#allocation7 + $0x15c] sm:$0xf]  ;;  %v2854_v50 = vor.u32 %v3234_v42, %v2853_v41  ;;  %v2715_v33 = vld [vmem:[#allocation7 + $0x484] sm:$0xf0]  ;;  %v2242_v35 = vor.u32 %v3077_v25, %v2239_v26  ;;  %v2435_v42 = vld [vmem:[#allocation7 + $0x254] sm:$0xf0] }
  0xbb   :  { %1809 = vmatpush.bf16.msrb.mxu1 %v2490_v48  ;;  %v3154_v48 = vld [vmem:[#allocation7 + $0x31c] sm:$0xf]  ;;  %v2326_v57 = vor.u32 %v3098_v45, %v2323_v47  ;;  %v3189_v45 = vld [vmem:[#allocation7 + $0x434] sm:$0xf]  ;;  %v2407_v54 = vld [vmem:[#allocation7 + $0x21c] sm:$0xf0] }
  0xbc   :  { %1749 = vmatmul.bf16.vlgmr.msra.gmra.mxu0 %v3486_v1  ;;  %v2550_v58 = vor.u32 %v3154_v48, %v2547_v49  ;;  %v3126_v41 = vld [vmem:[#allocation7 + $0x23c] sm:$0xf]  ;;  %v3245_v49 = vld [vmem:[#allocation7 + $0x5f4] sm:$0xf]  ;;  %v2329_v19 = vld [vmem:[#allocation7 + $0x160] sm:$0xf] }
  0xbd   :  { %1821 = vmatpush.bf16.msrb.mxu2 %v2742_v55  ;;  %1762 = vmatmul.bf16.vlgmr.msra.gmra.mxu1 %v3488_v6  ;;  %v3217_v55 = vld [vmem:[#allocation7 + $0x514] sm:$0xf]  ;;  %v2438_v48 = vor.u32 %v3126_v41, %v2435_v42  ;;  %v3168_v25 = vld [vmem:[#allocation7 + $0x38c] sm:$0xf]  ;;  %v2603_v26 = vld [vmem:[#allocation7 + $0x3a4] sm:$0xf0] }
  0xbe   :  { %1834 = vmatpush.bf16.msrb.mxu3 %v2966_v56  ;;  %1797 = vmatpush.bf16.msrb.mxu0 %v2238_v59  ;;  %v2799_v56 = vld [vmem:[#allocation7 + $0x52c] sm:$0xf0]  ;;  %v3273_v59 = vld [vmem:[#allocation7 + $0x6d4] sm:$0xf]  ;;  %v2525_v42 = vld [vmem:[#allocation7 + $0x2e8] sm:$0xf] }
  0xbf   :  { %1810 = vmatpush.bf16.msrb.mxu1 %v2462_v60  ;;  %v3023_v60 = vld [vmem:[#allocation7 + $0x6ec] sm:$0xf0] }
  0xc1   :  { %1822 = vmatpush.bf16.msrb.mxu2 %v2714_v4  ;;  %v2802_v4 = vor.u32 %v3217_v55, %v2799_v56 }
  0xc2   :  { %1835 = vmatpush.bf16.msrb.mxu3 %v2938_v5  ;;  %1798 = vmatpush.bf16.msrb.mxu0 %v2210_v9  ;;  %v3026_v5 = vor.u32 %v3273_v59, %v3023_v60  ;;  %v2298_v9 = vor.u32 %v3091_v61, %v2295_v63  ;;  %v3238_v59 = vld [vmem:[#allocation7 + $0x5bc] sm:$0xf]  ;;  %v2186_v60 = vor.u32 %v3063_v51, %v2183_v52  ;;  %v3056_v63 = vld [vmem:[#allocation7 + $0xc] sm:$0xf]  ;;  %v2273_v51 = vld [vmem:[#allocation7 + $0xf0] sm:$0xf] }
  0xc3   :  { %1811 = vmatpush.bf16.msrb.mxu1 %v2434_v10  ;;  %v2522_v10 = vor.u32 %v3147_v0, %v2519_v2  ;;  %v2410_v61 = vor.u32 %v3119_v53, %v2407_v54  ;;  %v2155_v0 = vld [vmem:[#allocation7 + $0x24] sm:$0xf0]  ;;  %v3112_v2 = vld [vmem:[#allocation7 + $0x1cc] sm:$0xf]  ;;  %v2497_v54 = vld [vmem:[#allocation7 + $0x2b0] sm:$0xf] }
  0xc4   :  { %1775 = vmatmul.bf16.vlgmr.msra.gmra.mxu2 %v3492_v28  ;;  %v2158_v13 = vor.u32 %v3056_v63, %v2155_v0  ;;  %v3088_v52 = vld [vmem:[#allocation7 + $0x108] sm:$0xf0]  ;;  %v2245_v63 = vld [vmem:[#allocation7 + $0xb8] sm:$0xf]  ;;  %v3081_v0 = vld [vmem:[#allocation7 + $0xd0] sm:$0xf0] }
  0xc5   :  { %1788 = vmatmul.bf16.vlgmr.msra.gmra.mxu3 %v3494_v34  ;;  %1823 = vmatpush.bf16.msrb.mxu2 %v2686_v17  ;;  %v2774_v17 = vor.u32 %v3210_v7, %v2771_v8  ;;  %v3109_v7 = vld [vmem:[#allocation7 + $0x1b0] sm:$0xf0]  ;;  %v2581_v8 = vld [vmem:[#allocation7 + $0x358] sm:$0xf] }
  0xc6   :  { %1836 = vmatpush.bf16.msrb.mxu3 %v2910_v18  ;;  %1799 = vmatpush.bf16.msrb.mxu0 %v2182_v22  ;;  %v2998_v18 = vor.u32 %v3266_v11, %v2995_v12  ;;  %v2494_v22 = vor.u32 %v3140_v15, %v2491_v16  ;;  %v3175_v11 = vld [vmem:[#allocation7 + $0x3c4] sm:$0xf]  ;;  %v2631_v12 = vld [vmem:[#allocation7 + $0x3dc] sm:$0xf0] }
  0xc7   :  { %1812 = vmatpush.bf16.msrb.mxu1 %v2406_v23  ;;  %v3259_v23 = vld [vmem:[#allocation7 + $0x664] sm:$0xf]  ;;  %v2855_v16 = vld [vmem:[#allocation7 + $0x59c] sm:$0xf0]  ;;  %v2634_v20 = vor.u32 %v3175_v11, %v2631_v12  ;;  %v3256_v11 = vld [vmem:[#allocation7 + $0x648] sm:$0xf0] }
  0xc8   :  { %v3231_v15 = vld [vmem:[#allocation7 + $0x584] sm:$0xf] }
  0xc9   :  { %1824 = vmatpush.bf16.msrb.mxu2 %v2658_v31  ;;  %v2970_v31 = vor.u32 %v3259_v23, %v2967_v24  ;;  %v3158_v23 = vld [vmem:[#allocation7 + $0x338] sm:$0xf0]  ;;  %v2858_v24 = vor.u32 %v3231_v15, %v2855_v16  ;;  %v2441_v16 = vld [vmem:[#allocation7 + $0x240] sm:$0xf] }
  0xca   :  { %1837 = vmatpush.bf16.msrb.mxu3 %v2882_v36  ;;  %1800 = vmatpush.bf16.msrb.mxu0 %v2154_v39  ;;  %v2466_v36 = vor.u32 %v3133_v27, %v2463_v29  ;;  %v3070_v39 = vld [vmem:[#allocation7 + $0x7c] sm:$0xf]  ;;  %v3224_v27 = vld [vmem:[#allocation7 + $0x54c] sm:$0xf]  ;;  %v2827_v29 = vld [vmem:[#allocation7 + $0x564] sm:$0xf0] }
  0xcb   :  { %1813 = vmatpush.bf16.msrb.mxu1 %v2378_v40  ;;  %v2211_v40 = vld [vmem:[#allocation7 + $0x94] sm:$0xf0] }
  0xcc   :  { %v2214_v47 = vor.u32 %v3070_v39, %v2211_v40  ;;  %v3095_v39 = vld [vmem:[#allocation7 + $0x140] sm:$0xf0]  ;;  %v2830_v40 = vor.u32 %v3224_v27, %v2827_v29  ;;  %v2413_v29 = vld [vmem:[#allocation7 + $0x208] sm:$0xf] }
  0xcd   :  { %1825 = vmatpush.bf16.msrb.mxu2 %v2630_v46  ;;  %1801 = vmatmul.bf16.vlgmr.msrb.gmra.mxu0 %v3486_v1  ;;  %v2687_v46 = vld [vmem:[#allocation7 + $0x44c] sm:$0xf0] }
  0xce   :  { %1845 = vmatpush.bf16.msra.mxu0 %v2354_v43  ;;  %1838 = vmatpush.bf16.msrb.mxu3 %v2854_v50  ;;  %v2718_v43 = vor.u32 %v3196_v32, %v2715_v33  ;;  %v2911_v50 = vld [vmem:[#allocation7 + $0x60c] sm:$0xf0]  ;;  %v2690_v55 = vor.u32 %v3189_v45, %v2687_v46  ;;  %v2777_v45 = vld [vmem:[#allocation7 + $0x4e0] sm:$0xf]  ;;  %v3214_v46 = vld [vmem:[#allocation7 + $0x4f8] sm:$0xf0] }
  0xcf   :  { %1858 = vmatpush.bf16.msra.mxu1 %v2578_v44  ;;  %v2942_v44 = vor.u32 %v3252_v37, %v2939_v38  ;;  %v2914_v56 = vor.u32 %v3245_v49, %v2911_v50  ;;  %v2606_v37 = vor.u32 %v3168_v25, %v2603_v26  ;;  %v2301_v38 = vld [vmem:[#allocation7 + $0x128] sm:$0xf]  ;;  %v3270_v49 = vld [vmem:[#allocation7 + $0x6b8] sm:$0xf0]  ;;  %v2778_v53 = vor.u32 %v3214_v46, %v2777_v45  ;;  %v3067_v26 = vld [vmem:[#allocation7 + $0x60] sm:$0xf0] }
  0xd0   :  { %1814 = vmatmul.bf16.vlgmr.msrb.gmra.mxu1 %v3488_v6  ;;  %v2189_v25 = vld [vmem:[#allocation7 + $0x48] sm:$0xf]  ;;  %v2359_v45 = vld [vmem:[#allocation7 + $0x1b4] sm:$0xf0]  ;;  %v3162_v46 = vld [vmem:[#allocation7 + $0x35c] sm:$0xf] }
  0xd1   :  { %1826 = vmatpush.bf16.msrb.mxu2 %v2602_v62  ;;  %v2883_v62 = vld [vmem:[#allocation7 + $0x5d4] sm:$0xf0] }
  0xd2   :  { %1846 = vmatpush.bf16.msra.mxu0 %v2326_v57  ;;  %1839 = vmatpush.bf16.msrb.mxu3 %v2826_v3  ;;  %v3182_v57 = vld [vmem:[#allocation7 + $0x3fc] sm:$0xf]  ;;  %v2379_v3 = vld [vmem:[#allocation7 + $0x1e4] sm:$0xf0] }
  0xd3   :  { %1859 = vmatpush.bf16.msra.mxu1 %v2550_v58  ;;  %v2659_v58 = vld [vmem:[#allocation7 + $0x414] sm:$0xf0]  ;;  %v2382_v14 = vor.u32 %v3112_v2, %v2379_v3 }
  0xd4   :  { %1827 = vmatmul.bf16.vlgmr.msrb.gmra.mxu2 %v3492_v28  ;;  %v2469_v3 = vld [vmem:[#allocation7 + $0x278] sm:$0xf] }
  0xd5   :  { %1871 = vmatpush.bf16.msra.mxu2 %v2802_v4  ;;  %1840 = vmatmul.bf16.vlgmr.msrb.gmra.mxu3 %v3494_v34  ;;  %v2357_v4 = vld [vmem:[#allocation7 + $0x198] sm:$0xf] }
  0xd6   :  { %1884 = vmatpush.bf16.msra.mxu3 %v3026_v5  ;;  %1847 = vmatpush.bf16.msra.mxu0 %v2298_v9  ;;  %v2662_v5 = vor.u32 %v3182_v57, %v2659_v58  ;;  %v3165_v9 = vld [vmem:[#allocation7 + $0x370] sm:$0xf0]  ;;  %v2749_v57 = vld [vmem:[#allocation7 + $0x4a8] sm:$0xf]  ;;  %v3207_v58 = vld [vmem:[#allocation7 + $0x4c0] sm:$0xf0] }
  0xd7   :  { %1860 = vmatpush.bf16.msra.mxu1 %v2522_v10  ;;  %v2886_v10 = vor.u32 %v3238_v59, %v2883_v62  ;;  %v2274_v59 = vor.u32 %v3088_v52, %v2273_v51  ;;  %v2750_v2 = vor.u32 %v3207_v58, %v2749_v57  ;;  %v2861_v52 = vld [vmem:[#allocation7 + $0x588] sm:$0xf] }
  0xd9   :  { %1872 = vmatpush.bf16.msra.mxu2 %v2774_v17  ;;  %v2358_v17 = vor.u32 %v3109_v7, %v2357_v4  ;;  %v3137_v4 = vld [vmem:[#allocation7 + $0x290] sm:$0xf0]  ;;  %v2721_v7 = vld [vmem:[#allocation7 + $0x470] sm:$0xf] }
  0xda   :  { %1885 = vmatpush.bf16.msra.mxu3 %v2998_v18  ;;  %1848 = vmatpush.bf16.msra.mxu0 %v2270_v21  ;;  %v2582_v18 = vor.u32 %v3165_v9, %v2581_v8  ;;  %v3102_v21 = vld [vmem:[#allocation7 + $0x178] sm:$0xf0]  ;;  %v3200_v8 = vld [vmem:[#allocation7 + $0x488] sm:$0xf0]  ;;  %v2246_v9 = vor.u32 %v3081_v0, %v2245_v63  ;;  %v2470_v12 = vor.u32 %v3137_v4, %v2469_v3  ;;  %v2609_v63 = vld [vmem:[#allocation7 + $0x390] sm:$0xf] }
  0xdb   :  { %1861 = vmatpush.bf16.msra.mxu1 %v2494_v22  ;;  %v2553_v22 = vld [vmem:[#allocation7 + $0x320] sm:$0xf]  ;;  %v2330_v32 = vor.u32 %v3102_v21, %v2329_v19  ;;  %v2722_v15 = vor.u32 %v3200_v8, %v2721_v7  ;;  %v2693_v19 = vld [vmem:[#allocation7 + $0x438] sm:$0xf]  ;;  %v3172_v0 = vld [vmem:[#allocation7 + $0x3a8] sm:$0xf0] }
  0xdc   :  { %v2554_v33 = vor.u32 %v3158_v23, %v2553_v22  ;;  %v2917_v22 = vld [vmem:[#allocation7 + $0x5f8] sm:$0xf]  ;;  %v3249_v23 = vld [vmem:[#allocation7 + $0x610] sm:$0xf0]  ;;  %v3228_v3 = vld [vmem:[#allocation7 + $0x568] sm:$0xf0] }
  0xdd   :  { %1873 = vmatpush.bf16.msra.mxu2 %v2746_v30  ;;  %v2805_v30 = vld [vmem:[#allocation7 + $0x518] sm:$0xf]  ;;  %v3218_v4 = vld [vmem:[#allocation7 + $0x51c] sm:$0xf] }
  0xde   :  { %1886 = vmatpush.bf16.msra.mxu3 %v2970_v31  ;;  %1849 = vmatpush.bf16.msra.mxu0 %v2242_v35  ;;  %v3221_v31 = vld [vmem:[#allocation7 + $0x530] sm:$0xf0]  ;;  %v3029_v35 = vld [vmem:[#allocation7 + $0x6d8] sm:$0xf]  ;;  %v3274_v8 = vld [vmem:[#allocation7 + $0x6dc] sm:$0xf] }
  0xdf   :  { %1862 = vmatpush.bf16.msra.mxu1 %v2466_v36  ;;  %v3277_v36 = vld [vmem:[#allocation7 + $0x6f0] sm:$0xf0]  ;;  %v2806_v41 = vor.u32 %v3221_v31, %v2805_v30  ;;  %v3123_v30 = vld [vmem:[#allocation7 + $0x220] sm:$0xf0]  ;;  %v2918_v31 = vor.u32 %v3249_v23, %v2917_v22  ;;  %v3003_v23 = vld [vmem:[#allocation7 + $0x6bc] sm:$0xf0] }
  0xe0   :  { %v3267_v22 = vld [vmem:[#allocation7 + $0x6a4] sm:$0xf] }
  0xe1   :  { %1874 = vmatpush.bf16.msra.mxu2 %v2718_v43  ;;  %v3151_v43 = vld [vmem:[#allocation7 + $0x300] sm:$0xf0] }
  0xe2   :  { %1887 = vmatpush.bf16.msra.mxu3 %v2942_v44  ;;  %1850 = vmatpush.bf16.msra.mxu0 %v2214_v47  ;;  %v3030_v44 = vor.u32 %v3277_v36, %v3029_v35  ;;  %v2302_v47 = vor.u32 %v3095_v39, %v2301_v38  ;;  %v2526_v50 = vor.u32 %v3151_v43, %v2525_v42  ;;  %v2889_v36 = vld [vmem:[#allocation7 + $0x5c0] sm:$0xf]  ;;  %v2161_v38 = vld [vmem:[#allocation7 + $0x10] sm:$0xf]  ;;  %v3116_v42 = vld [vmem:[#allocation7 + $0x1e8] sm:$0xf0] }
  0xe3   :  { %1863 = vmatpush.bf16.msra.mxu1 %v2438_v48  ;;  %v3001_v48 = vld [vmem:[#allocation7 + $0x6a0] sm:$0xf]  ;;  %v2190_v35 = vor.u32 %v3067_v26, %v2189_v25  ;;  %v2414_v39 = vor.u32 %v3123_v30, %v2413_v29  ;;  %v3085_v25 = vld [vmem:[#allocation7 + $0xf4] sm:$0xf]  ;;  %v2275_v26 = vld [vmem:[#allocation7 + $0x10c] sm:$0xf0] }
  0xe4   :  { %v3141_v29 = vld [vmem:[#allocation7 + $0x2b4] sm:$0xf]  ;;  %v2499_v30 = vld [vmem:[#allocation7 + $0x2cc] sm:$0xf0] }
  0xe5   :  { %1875 = vmatpush.bf16.msra.mxu2 %v2690_v55  ;;  %v3144_v55 = vld [vmem:[#allocation7 + $0x2c8] sm:$0xf0] }
  0xe6   :  { %1888 = vmatpush.bf16.msra.mxu3 %v2914_v56  ;;  %1851 = vmatpush.bf16.msra.mxu0 %v2186_v60  ;;  %v3002_v56 = vor.u32 %v3270_v49, %v3001_v48  ;;  %v2973_v60 = vld [vmem:[#allocation7 + $0x668] sm:$0xf]  ;;  %v2498_v62 = vor.u32 %v3144_v55, %v2497_v54  ;;  %v2583_v48 = vld [vmem:[#allocation7 + $0x374] sm:$0xf0] }
  0xe7   :  { %1864 = vmatpush.bf16.msra.mxu1 %v2410_v61  ;;  %v3263_v61 = vld [vmem:[#allocation7 + $0x680] sm:$0xf0]  ;;  %v2637_v49 = vld [vmem:[#allocation7 + $0x3c8] sm:$0xf]  ;;  %v2586_v57 = vor.u32 %v3162_v46, %v2583_v48  ;;  %v2723_v46 = vld [vmem:[#allocation7 + $0x48c] sm:$0xf0] }
  0xe8   :  { %v3253_v48 = vld [vmem:[#allocation7 + $0x634] sm:$0xf] }
  0xe9   :  { %1876 = vmatpush.bf16.msra.mxu2 %v2662_v5  ;;  %v2974_v5 = vor.u32 %v3263_v61, %v2973_v60  ;;  %v3155_v60 = vld [vmem:[#allocation7 + $0x324] sm:$0xf]  ;;  %v2555_v61 = vld [vmem:[#allocation7 + $0x33c] sm:$0xf0] }
  0xea   :  { %1889 = vmatpush.bf16.msra.mxu3 %v2886_v10  ;;  %1852 = vmatpush.bf16.msra.mxu0 %v2158_v13  ;;  %v2945_v10 = vld [vmem:[#allocation7 + $0x630] sm:$0xf]  ;;  %v2217_v13 = vld [vmem:[#allocation7 + $0x80] sm:$0xf] }
  0xeb   :  { %1865 = vmatpush.bf16.msra.mxu1 %v2382_v14  ;;  %v3074_v14 = vld [vmem:[#allocation7 + $0x98] sm:$0xf0] }
  0xec   :  { %v2218_v21 = vor.u32 %v3074_v14, %v2217_v13  ;;  %v2303_v13 = vld [vmem:[#allocation7 + $0x144] sm:$0xf0] }
  0xed   :  { %1877 = vmatpush.bf16.msra.mxu2 %v2634_v20  ;;  %1853 = vmatmul.bf16.vlgmr.msra.gmra.mxu0 %v3486_v1  ;;  %v3193_v20 = vld [vmem:[#allocation7 + $0x450] sm:$0xf0] }
  0xee   :  { %1897 = vmatpush.bf16.msrb.mxu0 %v2358_v17  ;;  %1890 = vmatpush.bf16.msra.mxu3 %v2858_v24  ;;  %v3130_v17 = vld [vmem:[#allocation7 + $0x258] sm:$0xf0]  ;;  %v2694_v27 = vor.u32 %v3193_v20, %v2693_v19  ;;  %v3211_v19 = vld [vmem:[#allocation7 + $0x4e4] sm:$0xf]  ;;  %v2779_v20 = vld [vmem:[#allocation7 + $0x4fc] sm:$0xf0] }
  0xef   :  { %1910 = vmatpush.bf16.msrb.mxu1 %v2582_v18  ;;  %v2946_v18 = vor.u32 %v3256_v11, %v2945_v10  ;;  %v2442_v24 = vor.u32 %v3130_v17, %v2441_v16  ;;  %v2558_v10 = vor.u32 %v3155_v60, %v2555_v61  ;;  %v2610_v11 = vor.u32 %v3172_v0, %v2609_v63  ;;  %v3148_v16 = vld [vmem:[#allocation7 + $0x2ec] sm:$0xf]  ;;  %v2527_v17 = vld [vmem:[#allocation7 + $0x304] sm:$0xf0]  ;;  %v3246_v60 = vld [vmem:[#allocation7 + $0x5fc] sm:$0xf] }
  0xf0   :  { %1866 = vmatmul.bf16.vlgmr.msra.gmra.mxu1 %v3488_v6  ;;  %v2919_v61 = vld [vmem:[#allocation7 + $0x614] sm:$0xf0]  ;;  %v3064_v63 = vld [vmem:[#allocation7 + $0x4c] sm:$0xf]  ;;  %v2191_v0 = vld [vmem:[#allocation7 + $0x64] sm:$0xf0] }
  0xf1   :  { %1878 = vmatpush.bf16.msra.mxu2 %v2606_v37  ;;  %v3242_v37 = vld [vmem:[#allocation7 + $0x5d8] sm:$0xf0] }
  0xf2   :  { %1898 = vmatpush.bf16.msrb.mxu0 %v2330_v32  ;;  %1891 = vmatpush.bf16.msra.mxu3 %v2830_v40  ;;  %v2665_v32 = vld [vmem:[#allocation7 + $0x400] sm:$0xf]  ;;  %v3060_v40 = vld [vmem:[#allocation7 + $0x28] sm:$0xf0] }
  0xf3   :  { %1911 = vmatpush.bf16.msrb.mxu1 %v2554_v33  ;;  %v3186_v33 = vld [vmem:[#allocation7 + $0x418] sm:$0xf0]  ;;  %v2162_v51 = vor.u32 %v3060_v40, %v2161_v38  ;;  %v2502_v38 = vor.u32 %v3141_v29, %v2499_v30  ;;  %v2247_v40 = vld [vmem:[#allocation7 + $0xd4] sm:$0xf0] }
  0xf4   :  { %1879 = vmatmul.bf16.vlgmr.msra.gmra.mxu2 %v3492_v28  ;;  %v2666_v43 = vor.u32 %v3186_v33, %v2665_v32  ;;  %v3204_v32 = vld [vmem:[#allocation7 + $0x4ac] sm:$0xf]  ;;  %v2751_v33 = vld [vmem:[#allocation7 + $0x4c4] sm:$0xf0] }
  0xf5   :  { %1923 = vmatpush.bf16.msrb.mxu2 %v2806_v41  ;;  %1892 = vmatmul.bf16.vlgmr.msra.gmra.mxu3 %v3494_v34  ;;  %v2385_v41 = vld [vmem:[#allocation7 + $0x1d0] sm:$0xf] }
  0xf6   :  { %1936 = vmatpush.bf16.msrb.mxu3 %v3030_v44  ;;  %1899 = vmatpush.bf16.msrb.mxu0 %v2302_v47  ;;  %v3106_v44 = vld [vmem:[#allocation7 + $0x19c] sm:$0xf]  ;;  %v2890_v47 = vor.u32 %v3242_v37, %v2889_v36  ;;  %v2386_v54 = vor.u32 %v3116_v42, %v2385_v41  ;;  %v3260_v36 = vld [vmem:[#allocation7 + $0x66c] sm:$0xf]  ;;  %v2975_v37 = vld [vmem:[#allocation7 + $0x684] sm:$0xf0]  ;;  %v2754_v41 = vor.u32 %v3204_v32, %v2751_v33 }
  0xf7   :  { %1912 = vmatpush.bf16.msrb.mxu1 %v2526_v50  ;;  %v3179_v50 = vld [vmem:[#allocation7 + $0x3e0] sm:$0xf0]  ;;  %v2362_v55 = vor.u32 %v3106_v44, %v2359_v45  ;;  %v3134_v42 = vld [vmem:[#allocation7 + $0x27c] sm:$0xf]  ;;  %v2978_v44 = vor.u32 %v3260_v36, %v2975_v37  ;;  %v3197_v45 = vld [vmem:[#allocation7 + $0x474] sm:$0xf] }
  0xf8   :  { %v2638_v58 = vor.u32 %v3179_v50, %v2637_v49  ;;  %v2947_v49 = vld [vmem:[#allocation7 + $0x64c] sm:$0xf0]  ;;  %v2561_v36 = vld [vmem:[#allocation7 + $0x328] sm:$0xf]  ;;  %v3159_v37 = vld [vmem:[#allocation7 + $0x340] sm:$0xf0] }
  0xf9   :  { %1924 = vmatpush.bf16.msrb.mxu2 %v2778_v53  ;;  %v3235_v53 = vld [vmem:[#allocation7 + $0x5a0] sm:$0xf0] }
  0xfa   :  { %1937 = vmatpush.bf16.msrb.mxu3 %v3002_v56  ;;  %1900 = vmatpush.bf16.msrb.mxu0 %v2274_v59  ;;  %v3099_v56 = vld [vmem:[#allocation7 + $0x164] sm:$0xf]  ;;  %v2331_v59 = vld [vmem:[#allocation7 + $0x17c] sm:$0xf0] }
  0xfb   :  { %1913 = vmatpush.bf16.msrb.mxu1 %v2498_v62  ;;  %v2862_v62 = vor.u32 %v3235_v53, %v2861_v52  ;;  %v2334_v7 = vor.u32 %v3099_v56, %v2331_v59  ;;  %v2219_v52 = vld [vmem:[#allocation7 + $0x9c] sm:$0xf0]  ;;  %v2726_v53 = vor.u32 %v3197_v45, %v2723_v46  ;;  %v2950_v56 = vor.u32 %v3253_v48, %v2947_v49 }
  0xfc   :  { %v3037_v46 = vld [vmem:[#allocation7 + $0x6e0] sm:$0xf]  ;;  %v2562_v48 = vor.u32 %v3159_v37, %v2561_v36  ;;  %v3131_v36 = vld [vmem:[#allocation7 + $0x260] sm:$0xf0] }
  0xfd   :  { %1925 = vmatpush.bf16.msrb.mxu2 %v2750_v2  ;;  %v2833_v2 = vld [vmem:[#allocation7 + $0x550] sm:$0xf] }
  0xfe   :  { %1938 = vmatpush.bf16.msrb.mxu3 %v2974_v5  ;;  %1901 = vmatpush.bf16.msrb.mxu0 %v2246_v9  ;;  %v2807_v5 = vld [vmem:[#allocation7 + $0x534] sm:$0xf0]  ;;  %v2834_v14 = vor.u32 %v3228_v3, %v2833_v2  ;;  %v3120_v3 = vld [vmem:[#allocation7 + $0x20c] sm:$0xf] }
  0xff   :  { %1914 = vmatpush.bf16.msrb.mxu1 %v2470_v12  ;;  %v3031_v9 = vld [vmem:[#allocation7 + $0x6f4] sm:$0xf0]  ;;  %v3092_v12 = vld [vmem:[#allocation7 + $0x12c] sm:$0xf] }
 0x101   :  { %1926 = vmatpush.bf16.msrb.mxu2 %v2722_v15  ;;  %v2810_v15 = vor.u32 %v3218_v4, %v2807_v5  ;;  %v2415_v4 = vld [vmem:[#allocation7 + $0x224] sm:$0xf0]  ;;  %v2922_v5 = vor.u32 %v3246_v60, %v2919_v61  ;;  %v3271_v61 = vld [vmem:[#allocation7 + $0x6c0] sm:$0xf0] }
 0x102   :  { %1939 = vmatpush.bf16.msrb.mxu3 %v2946_v18  ;;  %1902 = vmatpush.bf16.msrb.mxu0 %v2218_v21  ;;  %v3034_v18 = vor.u32 %v3274_v8, %v3031_v9  ;;  %v2306_v21 = vor.u32 %v3092_v12, %v2303_v13  ;;  %v2667_v8 = vld [vmem:[#allocation7 + $0x41c] sm:$0xf0]  ;;  %v2194_v9 = vor.u32 %v3064_v63, %v2191_v0  ;;  %v3057_v12 = vld [vmem:[#allocation7 + $0x14] sm:$0xf]  ;;  %v3009_v60 = vld [vmem:[#allocation7 + $0x6a8] sm:$0xf] }
 0x103   :  { %1915 = vmatpush.bf16.msrb.mxu1 %v2442_v24  ;;  %v2530_v24 = vor.u32 %v3148_v16, %v2527_v17  ;;  %v2418_v13 = vor.u32 %v3120_v3, %v2415_v4  ;;  %v2387_v16 = vld [vmem:[#allocation7 + $0x1ec] sm:$0xf0]  ;;  %v2281_v63 = vld [vmem:[#allocation7 + $0xf8] sm:$0xf]  ;;  %v3089_v0 = vld [vmem:[#allocation7 + $0x110] sm:$0xf0] }
 0x104   :  { %v2505_v4 = vld [vmem:[#allocation7 + $0x2b8] sm:$0xf] }
 0x105   :  { %1927 = vmatpush.bf16.msrb.mxu2 %v2694_v27  ;;  %v2782_v27 = vor.u32 %v3211_v19, %v2779_v20  ;;  %v3110_v19 = vld [vmem:[#allocation7 + $0x1b8] sm:$0xf0]  ;;  %v2589_v20 = vld [vmem:[#allocation7 + $0x360] sm:$0xf] }
 0x106   :  { %1940 = vmatpush.bf16.msrb.mxu3 %v2918_v31  ;;  %1903 = vmatpush.bf16.msrb.mxu0 %v2190_v35  ;;  %v3006_v31 = vor.u32 %v3267_v22, %v3003_v23  ;;  %v2278_v35 = vor.u32 %v3085_v25, %v2275_v26  ;;  %v3166_v22 = vld [vmem:[#allocation7 + $0x378] sm:$0xf0]  ;;  %v3176_v23 = vld [vmem:[#allocation7 + $0x3cc] sm:$0xf] }
 0x107   :  { %1916 = vmatpush.bf16.msrb.mxu1 %v2414_v39  ;;  %v3078_v39 = vld [vmem:[#allocation7 + $0xbc] sm:$0xf]  ;;  %v3232_v26 = vld [vmem:[#allocation7 + $0x58c] sm:$0xf]  ;;  %v2590_v32 = vor.u32 %v3166_v22, %v2589_v20  ;;  %v2477_v20 = vld [vmem:[#allocation7 + $0x280] sm:$0xf] }
 0x109   :  { %1928 = vmatpush.bf16.msrb.mxu2 %v2666_v43  ;;  %v2471_v43 = vld [vmem:[#allocation7 + $0x294] sm:$0xf0] }
 0x10a   :  { %1941 = vmatpush.bf16.msrb.mxu3 %v2890_v47  ;;  %1904 = vmatpush.bf16.msrb.mxu0 %v2162_v51  ;;  %v2250_v47 = vor.u32 %v3078_v39, %v2247_v40  ;;  %v2474_v50 = vor.u32 %v3134_v42, %v2471_v43  ;;  %v3071_v51 = vld [vmem:[#allocation7 + $0x84] sm:$0xf]  ;;  %v3169_v39 = vld [vmem:[#allocation7 + $0x394] sm:$0xf]  ;;  %v2611_v40 = vld [vmem:[#allocation7 + $0x3ac] sm:$0xf0] }
 0x10b   :  { %1917 = vmatpush.bf16.msrb.mxu1 %v2386_v54  ;;  %v3127_v54 = vld [vmem:[#allocation7 + $0x244] sm:$0xf]  ;;  %v2222_v59 = vor.u32 %v3071_v51, %v2219_v52  ;;  %v2835_v42 = vld [vmem:[#allocation7 + $0x56c] sm:$0xf0]  ;;  %v2813_v43 = vld [vmem:[#allocation7 + $0x520] sm:$0xf]  ;;  %v2614_v49 = vor.u32 %v3169_v39, %v2611_v40 }
 0x10c   :  { %v3096_v51 = vld [vmem:[#allocation7 + $0x148] sm:$0xf0]  ;;  %v2701_v39 = vld [vmem:[#allocation7 + $0x440] sm:$0xf]  ;;  %v3194_v40 = vld [vmem:[#allocation7 + $0x458] sm:$0xf0] }
 0x10d   :  { %1929 = vmatpush.bf16.msrb.mxu2 %v2638_v58  ;;  %1905 = vmatmul.bf16.vlgmr.msrb.gmra.mxu0 %v3486_v1  ;;  %v2695_v58 = vld [vmem:[#allocation7 + $0x454] sm:$0xf0] }
 0x10e   :  { %1949 = vmatpush.bf16.msra.mxu0 %v2362_v55  ;;  %1942 = vmatpush.bf16.msrb.mxu3 %v2862_v62  ;;  %v2443_v55 = vld [vmem:[#allocation7 + $0x25c] sm:$0xf0] }
 0x10f   :  { %1962 = vmatpush.bf16.msra.mxu1 %v2586_v57  ;;  %v3190_v57 = vld [vmem:[#allocation7 + $0x43c] sm:$0xf]  ;;  %v2446_v62 = vor.u32 %v3127_v54, %v2443_v55  ;;  %v2533_v54 = vld [vmem:[#allocation7 + $0x2f0] sm:$0xf]  ;;  %v3152_v55 = vld [vmem:[#allocation7 + $0x308] sm:$0xf0] }
 0x110   :  { %1918 = vmatmul.bf16.vlgmr.msrb.gmra.mxu1 %v3488_v6  ;;  %v2698_v2 = vor.u32 %v3190_v57, %v2695_v58  ;;  %v2785_v57 = vld [vmem:[#allocation7 + $0x4e8] sm:$0xf]  ;;  %v3215_v58 = vld [vmem:[#allocation7 + $0x500] sm:$0xf0] }
 0x111   :  { %1930 = vmatpush.bf16.msrb.mxu2 %v2610_v11  ;;  %v2891_v11 = vld [vmem:[#allocation7 + $0x5dc] sm:$0xf0]  ;;  %v2786_v3 = vor.u32 %v3215_v58, %v2785_v57  ;;  %v2897_v57 = vld [vmem:[#allocation7 + $0x5c8] sm:$0xf]  ;;  %v3243_v58 = vld [vmem:[#allocation7 + $0x5e0] sm:$0xf0] }
 0x112   :  { %1950 = vmatpush.bf16.msra.mxu0 %v2334_v7  ;;  %1943 = vmatpush.bf16.msrb.mxu3 %v2834_v14  ;;  %v3183_v7 = vld [vmem:[#allocation7 + $0x404] sm:$0xf]  ;;  %v2163_v14 = vld [vmem:[#allocation7 + $0x2c] sm:$0xf0] }
 0x113   :  { %1963 = vmatpush.bf16.msra.mxu1 %v2558_v10  ;;  %v3239_v10 = vld [vmem:[#allocation7 + $0x5c4] sm:$0xf]  ;;  %v2670_v17 = vor.u32 %v3183_v7, %v2667_v8  ;;  %v2166_v25 = vor.u32 %v3057_v12, %v2163_v14  ;;  %v3010_v8 = vor.u32 %v3271_v61, %v3009_v60  ;;  %v2282_v12 = vor.u32 %v3089_v0, %v2281_v63  ;;  %v3264_v14 = vld [vmem:[#allocation7 + $0x688] sm:$0xf0]  ;;  %v3061_v63 = vld [vmem:[#allocation7 + $0x30] sm:$0xf0] }
 0x114   :  { %1931 = vmatmul.bf16.vlgmr.msrb.gmra.mxu2 %v3492_v28 }
 0x115   :  { %1975 = vmatpush.bf16.msra.mxu2 %v2810_v15  ;;  %1944 = vmatmul.bf16.vlgmr.msrb.gmra.mxu3 %v3494_v34  ;;  %v3113_v15 = vld [vmem:[#allocation7 + $0x1d4] sm:$0xf] }
 0x116   :  { %1988 = vmatpush.bf16.msra.mxu3 %v3034_v18  ;;  %1951 = vmatpush.bf16.msra.mxu0 %v2306_v21  ;;  %v2365_v18 = vld [vmem:[#allocation7 + $0x1a0] sm:$0xf]  ;;  %v2894_v21 = vor.u32 %v3239_v10, %v2891_v11  ;;  %v2390_v29 = vor.u32 %v3113_v15, %v2387_v16  ;;  %v3208_v10 = vld [vmem:[#allocation7 + $0x4c8] sm:$0xf0] }
 0x117   :  { %1964 = vmatpush.bf16.msra.mxu1 %v2530_v24  ;;  %v2639_v24 = vld [vmem:[#allocation7 + $0x3e4] sm:$0xf0]  ;;  %v2366_v30 = vor.u32 %v3110_v19, %v2365_v18  ;;  %v3082_v18 = vld [vmem:[#allocation7 + $0xd8] sm:$0xf0] }
 0x118   :  { %v2642_v33 = vor.u32 %v3176_v23, %v2639_v24  ;;  %v2729_v23 = vld [vmem:[#allocation7 + $0x478] sm:$0xf]  ;;  %v3201_v24 = vld [vmem:[#allocation7 + $0x490] sm:$0xf0] }
 0x119   :  { %1976 = vmatpush.bf16.msra.mxu2 %v2782_v27  ;;  %v2863_v27 = vld [vmem:[#allocation7 + $0x5a4] sm:$0xf0] }
 0x11a   :  { %1989 = vmatpush.bf16.msra.mxu3 %v3006_v31  ;;  %1952 = vmatpush.bf16.msra.mxu0 %v2278_v35  ;;  %v2337_v31 = vld [vmem:[#allocation7 + $0x168] sm:$0xf]  ;;  %v3103_v35 = vld [vmem:[#allocation7 + $0x180] sm:$0xf0] }
 0x11b   :  { %1965 = vmatpush.bf16.msra.mxu1 %v2502_v38  ;;  %v2866_v38 = vor.u32 %v3232_v26, %v2863_v27  ;;  %v2338_v45 = vor.u32 %v3103_v35, %v2337_v31  ;;  %v2953_v26 = vld [vmem:[#allocation7 + $0x638] sm:$0xf]  ;;  %v3257_v27 = vld [vmem:[#allocation7 + $0x650] sm:$0xf0]  ;;  %v2225_v31 = vld [vmem:[#allocation7 + $0x88] sm:$0xf] }
 0x11c   :  { %v2449_v35 = vld [vmem:[#allocation7 + $0x248] sm:$0xf] }
 0x11d   :  { %1977 = vmatpush.bf16.msra.mxu2 %v2754_v41  ;;  %v3225_v41 = vld [vmem:[#allocation7 + $0x554] sm:$0xf] }
 0x11e   :  { %1990 = vmatpush.bf16.msra.mxu3 %v2978_v44  ;;  %1953 = vmatpush.bf16.msra.mxu0 %v2250_v47  ;;  %v3222_v44 = vld [vmem:[#allocation7 + $0x538] sm:$0xf0]  ;;  %v2838_v52 = vor.u32 %v3225_v41, %v2835_v42 }
 0x11f   :  { %1966 = vmatpush.bf16.msra.mxu1 %v2474_v50  ;;  %v3278_v47 = vld [vmem:[#allocation7 + $0x6f8] sm:$0xf0]  ;;  %v2309_v50 = vld [vmem:[#allocation7 + $0x130] sm:$0xf] }
 0x121   :  { %1978 = vmatpush.bf16.msra.mxu2 %v2726_v53  ;;  %v2814_v53 = vor.u32 %v3222_v44, %v2813_v43  ;;  %v2925_v43 = vld [vmem:[#allocation7 + $0x600] sm:$0xf]  ;;  %v3250_v44 = vld [vmem:[#allocation7 + $0x618] sm:$0xf0] }
 0x122   :  { %1991 = vmatpush.bf16.msra.mxu3 %v2950_v56  ;;  %1954 = vmatpush.bf16.msra.mxu0 %v2222_v59  ;;  %v3038_v56 = vor.u32 %v3278_v47, %v3037_v46  ;;  %v2310_v59 = vor.u32 %v3096_v51, %v2309_v50  ;;  %v2450_v46 = vor.u32 %v3131_v36, %v2449_v35  ;;  %v2197_v47 = vld [vmem:[#allocation7 + $0x50] sm:$0xf]  ;;  %v3124_v51 = vld [vmem:[#allocation7 + $0x228] sm:$0xf0] }
 0x123   :  { %1967 = vmatpush.bf16.msra.mxu1 %v2446_v62  ;;  %v2534_v62 = vor.u32 %v3152_v55, %v2533_v54  ;;  %v2421_v50 = vld [vmem:[#allocation7 + $0x210] sm:$0xf]  ;;  %v3187_v54 = vld [vmem:[#allocation7 + $0x420] sm:$0xf0] }
 0x124   :  { %v2422_v61 = vor.u32 %v3124_v51, %v2421_v50 }
 0x125   :  { %1979 = vmatpush.bf16.msra.mxu2 %v2698_v2  ;;  %v3516_v2 = vld [vmem:[#allocation9] sm:$0x7f] }
 0x126   :  { %1992 = vmatpush.bf16.msra.mxu3 %v2922_v5  ;;  %1955 = vmatpush.bf16.msra.mxu0 %v2194_v9  ;;  %v3145_v5 = vld [vmem:[#allocation7 + $0x2d0] sm:$0xf0]  ;;  %v2757_v9 = vld [vmem:[#allocation7 + $0x4b0] sm:$0xf]  ;;  %v523_v15 = vperm.slane %v3516_v2, 0 }
 0x127   :  { %1968 = vmatpush.bf16.msra.mxu1 %v2418_v13  ;;  %v2981_v13 = vld [vmem:[#allocation7 + $0x670] sm:$0xf]  ;;  %v2506_v16 = vor.u32 %v3145_v5, %v2505_v4  ;;  %v2758_v19 = vor.u32 %v3208_v10, %v2757_v9  ;;  %v3117_v4 = vld [vmem:[#allocation7 + $0x1f0] sm:$0xf0]  ;;  %v3180_v10 = vld [vmem:[#allocation7 + $0x3e8] sm:$0xf0] }
 0x128   :  { %v2982_v22 = vor.u32 %v3264_v14, %v2981_v13  ;;  %v2645_v9 = vld [vmem:[#allocation7 + $0x3d0] sm:$0xf]  ;;  %v3236_v14 = vld [vmem:[#allocation7 + $0x5a8] sm:$0xf0] }
 0x129   :  { %1980 = vmatpush.bf16.msra.mxu2 %v2670_v17  ;;  %v1698_v7 = vpop.f32.mrf.mxu0  ;;  %v2253_v17 = vld [vmem:[#allocation7 + $0xc0] sm:$0xf]  ;;  %v2869_v13 = vld [vmem:[#allocation7 + $0x590] sm:$0xf] }
 0x12a   :  { %1993 = vmatpush.bf16.msra.mxu3 %v2894_v21  ;;  %1956 = vmatpush.bf16.msra.mxu0 %v2166_v25  ;;  %v1711_v11 = vpop.f32.mrf.mxu1  ;;  %v3138_v21 = vld [vmem:[#allocation7 + $0x298] sm:$0xf0]  ;;  %v2254_v25 = vor.u32 %v3082_v18, %v2253_v17  ;;  %v524_v17 = vperm.slane %v3516_v2, 1  ;;  %v2870_v18 = vor.u32 %v3236_v14, %v2869_v13 }
 0x12b   :  { %1969 = vmatpush.bf16.msra.mxu1 %v2390_v29  ;;  %v1699_v29 = vadd.f32 %v1698_v7, %v523_v15 }
 0x12d   :  { %1981 = vmatpush.bf16.msra.mxu2 %v2642_v33  ;;  %1957 = vmatmul.bf16.vlgmr.msra.gmra.mxu0 %v3486_v1  ;;  %v2730_v33 = vor.u32 %v3201_v24, %v2729_v23  ;;  %v3229_v23 = vld [vmem:[#allocation7 + $0x570] sm:$0xf0] }
 0x12e   :  { %2001 = vmatpush.bf16.msrb.mxu0 %v2366_v30  ;;  %1994 = vmatpush.bf16.msra.mxu3 %v2866_v38  ;;  %v2478_v30 = vor.u32 %v3138_v21, %v2477_v20  ;;  %v2954_v38 = vor.u32 %v3257_v27, %v2953_v26  ;;  %v3173_v20 = vld [vmem:[#allocation7 + $0x3b0] sm:$0xf0] }
 0x12f   :  { %2014 = vmatpush.bf16.msrb.mxu1 %v2590_v32  ;;  %v3075_v32 = vld [vmem:[#allocation7 + $0xa0] sm:$0xf0] }
 0x130   :  { %1970 = vmatmul.bf16.vlgmr.msra.gmra.mxu1 %v3488_v6  ;;  %v2226_v42 = vor.u32 %v3075_v32, %v2225_v31 }
 0x131   :  { %1982 = vmatpush.bf16.msra.mxu2 %v2614_v49  ;;  %v1700_v37 = vpop.f32.mrf.mxu0  ;;  %v2702_v49 = vor.u32 %v3194_v40, %v2701_v39  ;;  %v525_v39 = vperm.slane %v3516_v2, 2 }
 0x132   :  { %2002 = vmatpush.bf16.msrb.mxu0 %v2338_v45  ;;  %1995 = vmatpush.bf16.msra.mxu3 %v2838_v52  ;;  %v1713_v41 = vpop.f32.mrf.mxu1  ;;  %v1712_v45 = vadd.f32 %v1711_v11, %v1699_v29  ;;  %v2926_v52 = vor.u32 %v3250_v44, %v2925_v43 }
 0x133   :  { %2015 = vmatpush.bf16.msrb.mxu1 %v2562_v48  ;;  %v3068_v48 = vld [vmem:[#allocation7 + $0x68] sm:$0xf0] }
 0x134   :  { %1983 = vmatmul.bf16.vlgmr.msra.gmra.mxu2 %v3492_v28 }
 0x135   :  { %2027 = vmatpush.bf16.msrb.mxu2 %v2814_v53  ;;  %1996 = vmatmul.bf16.vlgmr.msra.gmra.mxu3 %v3494_v34  ;;  %v2673_v53 = vld [vmem:[#allocation7 + $0x408] sm:$0xf] }
 0x136   :  { %2040 = vmatpush.bf16.msrb.mxu3 %v3038_v56  ;;  %2003 = vmatpush.bf16.msrb.mxu0 %v2310_v59  ;;  %v2198_v56 = vor.u32 %v3068_v48, %v2197_v47  ;;  %v2674_v0 = vor.u32 %v3187_v54, %v2673_v53  ;;  %v526_v53 = vperm.slane %v3516_v2, 3 }
 0x137   :  { %2016 = vmatpush.bf16.msrb.mxu1 %v2534_v62  ;;  %v1724_v55 = vpop.f32.mrf.mxu2  ;;  %v2169_v62 = vld [vmem:[#allocation7 + $0x18] sm:$0xf] }
 0x138   :  { %v1725_v59 = vadd.f32 %v1724_v55, %v1712_v45  ;;  %v1737_v60 = vpop.f32.mrf.mxu3 }
 0x139   :  { %2028 = vmatpush.bf16.msrb.mxu2 %v2786_v3  ;;  %v2393_v3 = vld [vmem:[#allocation7 + $0x1d8] sm:$0xf]  ;;  %v1750_v7 = vpop.f32.mrf.mxu0 }
 0x13a   :  { %2041 = vmatpush.bf16.msrb.mxu3 %v3010_v8  ;;  %2004 = vmatpush.bf16.msrb.mxu0 %v2282_v12  ;;  %v1738_v5 = vadd.f32 %v1737_v60, %v1725_v59  ;;  %v2898_v8 = vor.u32 %v3243_v58, %v2897_v57  ;;  %v1763_v11 = vpop.f32.mrf.mxu1  ;;  %v2170_v12 = vor.u32 %v3061_v63, %v2169_v62 }
 0x13b   :  { %2017 = vmatpush.bf16.msrb.mxu1 %v2506_v16  ;;  %v2394_v15 = vor.u32 %v3117_v4, %v2393_v3  ;;  %v2646_v16 = vor.u32 %v3180_v10, %v2645_v9  ;;  %v1751_v27 = vadd.f32 %v1750_v7, %v524_v17 }
 0x13c   :  { %3288 = vtanh.f32 %v1738_v5  ;;  %v527_v5 = vperm.slane %v3516_v2, 4 }
 0x13d   :  { %2029 = vmatpush.bf16.msrb.mxu2 %v2758_v19  ;;  %v2617_v19 = vld [vmem:[#allocation7 + $0x398] sm:$0xf]  ;;  %v1764_v32 = vadd.f32 %v1763_v11, %v1751_v27 }
 0x13e   :  { %2042 = vmatpush.bf16.msrb.mxu3 %v2982_v22  ;;  %2005 = vmatpush.bf16.msrb.mxu0 %v2254_v25  ;;  %v2841_v22 = vld [vmem:[#allocation7 + $0x558] sm:$0xf]  ;;  %v2618_v25 = vor.u32 %v3173_v20, %v2617_v19  ;;  %v528_v20 = vperm.slane %v3516_v2, 5 }
 0x13f   :  { %2018 = vmatpush.bf16.msrb.mxu1 %v2478_v30  ;;  %v1726_v21 = vpop.f32.mrf.mxu2  ;;  %v2842_v30 = vor.u32 %v3229_v23, %v2841_v22 }
 0x140   :  { %v1739_v24 = vpop.f32.mrf.mxu3 }
 0x141   :  { %2030 = vmatpush.bf16.msrb.mxu2 %v2730_v33  ;;  %v1752_v29 = vpop.f32.mrf.mxu0 }
 0x142   :  { %2043 = vmatpush.bf16.msrb.mxu3 %v2954_v38  ;;  %2006 = vmatpush.bf16.msrb.mxu0 %v2226_v42  ;;  %v3289_v26 = vpop.eup %3288  ;;  %v1765_v31 = vpop.f32.mrf.mxu1 }
 0x143   :  { %2019 = vmatpush.bf16.msrb.mxu1 %v2450_v46  ;;  %2060 = vst [vmem:[%s3557_s5] sm:$0xff] %v3289_v26 }
 0x145   :  { %2031 = vmatpush.bf16.msrb.mxu2 %v2702_v49 }
 0x146   :  { %2044 = vmatpush.bf16.msrb.mxu3 %v2926_v52  ;;  %2007 = vmatpush.bf16.msrb.mxu0 %v2198_v56 }
 0x147   :  { %2020 = vmatpush.bf16.msrb.mxu1 %v2422_v61  ;;  %v1776_v33 = vpop.f32.mrf.mxu2 }
 0x148   :  { %v1777_v35 = vadd.f32 %v1776_v33, %v1764_v32  ;;  %v1789_v36 = vpop.f32.mrf.mxu3 }
 0x149   :  { %2032 = vmatpush.bf16.msrb.mxu2 %v2674_v0 }
 0x14a   :  { %2045 = vmatpush.bf16.msrb.mxu3 %v2898_v8  ;;  %2008 = vmatpush.bf16.msrb.mxu0 %v2170_v12  ;;  %v1802_v37 = vpop.f32.mrf.mxu0 }
 0x14b   :  { %2021 = vmatpush.bf16.msrb.mxu1 %v2394_v15  ;;  %v1803_v42 = vadd.f32 %v1802_v37, %v525_v39 }
 0x14d   :  { %2033 = vmatpush.bf16.msrb.mxu2 %v2646_v16  ;;  %2009 = vmatmul.bf16.vlgmr.msrb.gmra.mxu0 %v3486_v1  ;;  %v1790_v1 = vadd.f32 %v1789_v36, %v1777_v35  ;;  %v1815_v38 = vpop.f32.mrf.mxu1  ;;  %v529_v36 = vperm.slane %v3516_v2, 6 }
 0x14e   :  { %2046 = vmatpush.bf16.msrb.mxu3 %v2870_v18  ;;  %2022 = vmatmul.bf16.vlgmr.msrb.gmra.mxu1 %v3488_v6  ;;  %v1816_v45 = vadd.f32 %v1815_v38, %v1803_v42 }
 0x14f   :  { %3290 = vtanh.f32 %v1790_v1  ;;  %v1778_v40 = vpop.f32.mrf.mxu2 }
 0x150   :  { %v1791_v41 = vpop.f32.mrf.mxu3 }
 0x151   :  { %2034 = vmatpush.bf16.msrb.mxu2 %v2618_v25 }
 0x152   :  { %2047 = vmatpush.bf16.msrb.mxu3 %v2842_v30  ;;  %v1804_v43 = vpop.f32.mrf.mxu0 }
 0x154   :  { %2035 = vmatmul.bf16.vlgmr.msrb.gmra.mxu2 %v3492_v28 }
 0x155   :  { %2048 = vmatmul.bf16.vlgmr.msrb.gmra.mxu3 %v3494_v34  ;;  %v3291_v6 = vpop.eup %3290  ;;  %v1817_v44 = vpop.f32.mrf.mxu1 }
 0x156   :  { %2061 = vst [vmem:[%s3557_s5 + $0x8] sm:$0xff] %v3291_v6 }
 0x157   :  { %v1828_v28 = vpop.f32.mrf.mxu2 }
 0x158   :  { %v1841_v46 = vpop.f32.mrf.mxu3  ;;  %v1829_v34 = vadd.f32 %v1828_v28, %v1816_v45 }
 0x15a   :  { %v1842_v47 = vadd.f32 %v1841_v46, %v1829_v34 }
 0x15c   :  { %3292 = vtanh.f32 %v1842_v47 }
 0x15f   :  { %v1830_v48 = vpop.f32.mrf.mxu2 }
 0x160   :  { %v1843_v49 = vpop.f32.mrf.mxu3 }
 0x162   :  { %v3293_v50 = vpop.eup %3292 }
 0x163   :  { %2062 = vst [vmem:[%s3557_s5 + $0x10] sm:$0xff] %v3293_v50 }
 0x16a   :  { %v1854_v51 = vpop.f32.mrf.mxu0 }
 0x16b   :  { %v1855_v54 = vadd.f32 %v1854_v51, %v526_v53 }
 0x16d   :  { %v1867_v52 = vpop.f32.mrf.mxu1 }
 0x16e   :  { %v1868_v57 = vadd.f32 %v1867_v52, %v1855_v54 }
 0x172   :  { %v1856_v55 = vpop.f32.mrf.mxu0 }
 0x175   :  { %v1869_v56 = vpop.f32.mrf.mxu1 }
 0x177   :  { %v1880_v58 = vpop.f32.mrf.mxu2 }
 0x178   :  { %v1881_v59 = vadd.f32 %v1880_v58, %v1868_v57  ;;  %v1893_v60 = vpop.f32.mrf.mxu3 }
 0x17a   :  { %v1894_v61 = vadd.f32 %v1893_v60, %v1881_v59 }
 0x17c   :  { %3294 = vtanh.f32 %v1894_v61 }
 0x17f   :  { %v1882_v62 = vpop.f32.mrf.mxu2 }
 0x180   :  { %v1895_v63 = vpop.f32.mrf.mxu3 }
 0x182   :  { %v3295_v0 = vpop.eup %3294 }
 0x183   :  { %2063 = vst [vmem:[%s3557_s5 + $0x18] sm:$0xff] %v3295_v0 }
 0x18a   :  { %v1906_v3 = vpop.f32.mrf.mxu0 }
 0x18b   :  { %v1907_v7 = vadd.f32 %v1906_v3, %v527_v5 }
 0x18d   :  { %v1919_v4 = vpop.f32.mrf.mxu1 }
 0x18e   :  { %v1920_v10 = vadd.f32 %v1919_v4, %v1907_v7 }
 0x192   :  { %v1908_v8 = vpop.f32.mrf.mxu0 }
 0x195   :  { %v1921_v9 = vpop.f32.mrf.mxu1 }
 0x197   :  { %v1932_v11 = vpop.f32.mrf.mxu2 }
 0x198   :  { %v1933_v12 = vadd.f32 %v1932_v11, %v1920_v10  ;;  %v1945_v13 = vpop.f32.mrf.mxu3 }
 0x19a   :  { %v1946_v14 = vadd.f32 %v1945_v13, %v1933_v12 }
 0x19c   :  { %3296 = vtanh.f32 %v1946_v14 }
 0x19f   :  { %v1934_v15 = vpop.f32.mrf.mxu2 }
 0x1a0   :  { %v1947_v16 = vpop.f32.mrf.mxu3 }
 0x1a2   :  { %v3297_v17 = vpop.eup %3296 }
 0x1a3   :  { %2064 = vst [vmem:[%s3557_s5 + $0x20] sm:$0xff] %v3297_v17 }
 0x1aa   :  { %v1958_v18 = vpop.f32.mrf.mxu0 }
 0x1ab   :  { %v1959_v21 = vadd.f32 %v1958_v18, %v528_v20 }
 0x1ad   :  { %v1971_v19 = vpop.f32.mrf.mxu1 }
 0x1ae   :  { %v1972_v24 = vadd.f32 %v1971_v19, %v1959_v21 }
 0x1b2   :  { %v1960_v22 = vpop.f32.mrf.mxu0 }
 0x1b5   :  { %v1973_v23 = vpop.f32.mrf.mxu1 }
 0x1b7   :  { %v1984_v25 = vpop.f32.mrf.mxu2 }
 0x1b8   :  { %v1985_v26 = vadd.f32 %v1984_v25, %v1972_v24  ;;  %v1997_v27 = vpop.f32.mrf.mxu3 }
 0x1ba   :  { %v1998_v29 = vadd.f32 %v1997_v27, %v1985_v26 }
 0x1bc   :  { %3298 = vtanh.f32 %v1998_v29 }
 0x1bf   :  { %v1986_v30 = vpop.f32.mrf.mxu2 }
 0x1c0   :  { %v1999_v31 = vpop.f32.mrf.mxu3 }
 0x1c2   :  { %v3299_v32 = vpop.eup %3298 }
 0x1c3   :  { %2065 = vst [vmem:[%s3557_s5 + $0x28] sm:$0xff] %v3299_v32 }
 0x1ca   :  { %v2010_v33 = vpop.f32.mrf.mxu0 }
 0x1cb   :  { %v2023_v35 = vpop.f32.mrf.mxu1  ;;  %v2011_v1 = vadd.f32 %v2010_v33, %v529_v36 }
 0x1cd   :  { %v2024_v39 = vadd.f32 %v2023_v35, %v2011_v1 }
 0x1d2   :  { %v2012_v37 = vpop.f32.mrf.mxu0 }
 0x1d3   :  { %v2025_v38 = vpop.f32.mrf.mxu1 }
 0x1d7   :  { %v2036_v40 = vpop.f32.mrf.mxu2 }
 0x1d8   :  { %v2037_v41 = vadd.f32 %v2036_v40, %v2024_v39  ;;  %v2049_v6 = vpop.f32.mrf.mxu3 }
 0x1da   :  { %v2050_v42 = vadd.f32 %v2049_v6, %v2037_v41 }
 0x1dc   :  { %3300 = vtanh.f32 %v2050_v42 }
 0x1df   :  { %v2038_v43 = vpop.f32.mrf.mxu2 }
 0x1e0   :  { %v2051_v44 = vpop.f32.mrf.mxu3 }
 0x1e2   :  { %v3301_v45 = vpop.eup %3300 }
 0x1e3   :  { %2067 = vst.msk [vmem:[%s3557_s5 + $0x30] sm:$0xff] %vm2066_vm1, %v3301_v45 }
 0x1e4   :  { %2072 = vsyncpa [#allocation3], 1 }
 0x1e5   :  { %2073 = vsyncpa [#allocation5], 1 }
 0x1e6   :  { %2074 = vsyncpa [#allocation8], 1 }

</bundles_post_ra>
